<compile_context>
chip_gen: v7x
topology: tpu7x:2x2x1
jax: 0.10.0
libtpu: 0.0.40
codegen_flags: <defaults>
</compile_context>

<pallas_src>
import functools

import jax
import jax.numpy as jnp
from jax.experimental import pallas as pl
from jax.experimental.pallas import tpu as pltpu


_VMEM_SPEC = pl.BlockSpec(memory_space=pltpu.MemorySpace.VMEM)


def _round_up(n, m):
    return ((n + m - 1) // m) * m


# ----------------------------- Fused Pallas kernel ---------------------------


def _make_fused_lstm_kernel(num_layers, seq_len, batch_pad, hidden_size):
    """Builds a kernel with signature:

    kernel(x, h0, c0, [w_x_l, w_h_l, b_l]*num_layers, w_head, b_head,
           out, seq_scratch, proj_scratch)

      x      : (T*B, I)         flattened input sequence (B padded to mult of 8)
      h0, c0 : (L, B, H)        initial states
      w_x_l  : (K_l, 4H)        input->gates weight (transposed), K_0=I, else H
      w_h_l  : (H, 4H)          hidden->gates weight (transposed)
      b_l    : (1, 4H)          combined bias (b_ih + b_hh)
      w_head : (H, O), b_head : (1, O)
      out    : (B, O)           head output
      seq    : (T*B, H)  VMEM   inter-layer hidden sequence
      proj   : (T*B, 4H) VMEM   precomputed input projection (+bias)
    """
    T, B, H = seq_len, batch_pad, hidden_size
    TB = T * B

    def kernel(*refs):
        n_in = 3 + 3 * num_layers + 2
        x_ref, h0_ref, c0_ref = refs[0], refs[1], refs[2]
        layer_refs = refs[3:3 + 3 * num_layers]
        w_head_ref = refs[n_in - 2]
        b_head_ref = refs[n_in - 1]
        out_ref = refs[n_in]
        seq_ref = refs[n_in + 1]
        proj_ref = refs[n_in + 2]

        h_top = None
        for layer in range(num_layers):
            w_x = layer_refs[3 * layer][...]       # (K, 4H)
            w_h = layer_refs[3 * layer + 1][...]   # (H, 4H)
            b = layer_refs[3 * layer + 2][...]     # (1, 4H)
            is_top = layer == num_layers - 1

            # Flattened (T*B, K) layer input.  Loaded (consumed into proj_ref)
            # BEFORE the recurrence below may overwrite seq_ref.
            x2d = x_ref[...] if layer == 0 else seq_ref[...]

            # Whole-sequence input projection: no recurrent dependence, so it
            # runs off the serial critical path as ONE big MXU matmul.  Bias
            # (broadcast hoisted, single add) folded in here, not in the loop.
            b_full = jnp.broadcast_to(b, (TB, 4 * H))
            proj_ref[...] = (
                jnp.dot(x2d, w_x, preferred_element_type=jnp.float32) + b_full)

            # Serial recurrence: only h @ W_h on the critical path.  Static
            # unroll -> static, sublane-aligned slices into the scratches.
            h = h0_ref[layer]
            c = c0_ref[layer]
            for t in range(T):
                gates = proj_ref[t * B:(t + 1) * B, :] + jnp.dot(
                    h, w_h, preferred_element_type=jnp.float32)    # (B, 4H)
                # Full-vreg transcendentals (EUP slot has slack), then slice
                # the 32-lane gate windows. PyTorch gate order: i, f, g, o.
                sg = jax.nn.sigmoid(gates)
                tg = jnp.tanh(gates)
                i_g = sg[:, 0 * H:1 * H]
                f_g = sg[:, 1 * H:2 * H]
                g_g = tg[:, 2 * H:3 * H]
                o_g = sg[:, 3 * H:4 * H]
                c = f_g * c + i_g * g_g
                h = o_g * jnp.tanh(c)
                if not is_top:
                    # Lower layers: keep the sequence in VMEM scratch only.
                    seq_ref[t * B:(t + 1) * B, :] = h
                # Top layer: never store per-timestep output (only final h
                # feeds the head).
            h_top = h

        # Fused Linear head: o = h_T @ W_c2o^T + b_c2o
        out_ref[...] = (
            jnp.dot(h_top, w_head_ref[...], preferred_element_type=jnp.float32)
            + b_head_ref[...])

    return kernel


# ------------------------------ Host wrapper ---------------------------------


@functools.partial(jax.jit, static_argnames=("num_layers",))
def lstm_forward(x, hidden_cell, params, num_layers):
    """Matches LSTM.forward(input, hidden_cell): returns c2o(output[-1])."""
    T, B, I = x.shape
    H = hidden_cell.shape[-1]
    O = params["w_c2o_t"].shape[1]

    # Pad batch to a multiple of 8 (f32 sublane count) for sublane-dense work,
    # and flatten (T, B, I) -> (T*B, I) on the host so the kernel is all-2D.
    B_pad = _round_up(max(B, 8), 8)
    pad_b = B_pad - B
    x_p = jnp.pad(x, ((0, 0), (0, pad_b), (0, 0))).reshape(T * B_pad, I)
    h0_p = jnp.pad(hidden_cell[0], ((0, 0), (0, pad_b), (0, 0)))
    c0_p = jnp.pad(hidden_cell[1], ((0, 0), (0, pad_b), (0, 0)))

    flat_layer_params = []
    for (w_x_t, w_h_t, b) in params["layers"]:
        flat_layer_params += [w_x_t, w_h_t, b]

    n_in = 3 + 3 * num_layers + 2

    # TODO(synk): for large T*B*H (esp. v7x's 64 MiB VMEM / v5e's 16 MiB scoped
    # default), chunk time with a grid axis + vmem_limit_bytes instead of
    # keeping the whole sequence resident; not needed at these sizes.
    out_pad = pl.pallas_call(
        _make_fused_lstm_kernel(num_layers, T, B_pad, H),
        out_shape=jax.ShapeDtypeStruct((B_pad, O), jnp.float32),
        in_specs=[_VMEM_SPEC] * n_in,
        out_specs=_VMEM_SPEC,
        scratch_shapes=[
            pltpu.VMEM((T * B_pad, H), jnp.float32),       # inter-layer seq
            pltpu.VMEM((T * B_pad, 4 * H), jnp.float32),   # input projection
        ],
    )(x_p, h0_p, c0_p, *flat_layer_params,
      params["w_c2o_t"], params["b_c2o"])

    return out_pad[:B]


# ------------------------------ Param init -----------------------------------


def init_params(key, input_size, hidden_size, output_size, num_layers):
    """Deterministic PyTorch-style uniform(-1/sqrt(H), 1/sqrt(H)) init."""
    bound = 1.0 / jnp.sqrt(jnp.float32(hidden_size))
    layers = []
    for layer in range(num_layers):
        in_sz = input_size if layer == 0 else hidden_size
        key, k1, k2, k3, k4 = jax.random.split(key, 5)
        w_ih = jax.random.uniform(k1, (4 * hidden_size, in_sz),
                                  jnp.float32, -bound, bound)
        w_hh = jax.random.uniform(k2, (4 * hidden_size, hidden_size),
                                  jnp.float32, -bound, bound)
        b_ih = jax.random.uniform(k3, (4 * hidden_size,), jnp.float32,
                                  -bound, bound)
        b_hh = jax.random.uniform(k4, (4 * hidden_size,), jnp.float32,
                                  -bound, bound)
        # (in_sz, 4H), (H, 4H), (1, 4H): transposed + combined bias.
        layers.append((w_ih.T, w_hh.T, (b_ih + b_hh).reshape(1, -1)))
    key, k5, k6 = jax.random.split(key, 3)
    lin_bound = 1.0 / jnp.sqrt(jnp.float32(hidden_size))
    w_c2o = jax.random.uniform(k5, (output_size, hidden_size), jnp.float32,
                               -lin_bound, lin_bound)
    b_c2o = jax.random.uniform(k6, (output_size,), jnp.float32,
                               -lin_bound, lin_bound)
    return {"layers": layers, "w_c2o_t": w_c2o.T,
            "b_c2o": b_c2o.reshape(1, -1)}


# ------------------------------ Pure-JAX ref ----------------------------------


def ref_forward(x, hidden_cell, params, num_layers):
    h0_all, c0_all = hidden_cell[0], hidden_cell[1]
    layer_in = x
    H = h0_all.shape[-1]
    for layer in range(num_layers):
        wih_t, whh_t, b = params["layers"][layer]
        h, c = h0_all[layer], c0_all[layer]
        outs = []
        for t in range(x.shape[0]):
            g = layer_in[t] @ wih_t + h @ whh_t + b
            i_g = jax.nn.sigmoid(g[:, :H])
            f_g = jax.nn.sigmoid(g[:, H:2 * H])
            g_g = jnp.tanh(g[:, 2 * H:3 * H])
            o_g = jax.nn.sigmoid(g[:, 3 * H:])
            c = f_g * c + i_g * g_g
            h = o_g * jnp.tanh(c)
            outs.append(h)
        layer_in = jnp.stack(outs)
    return layer_in[-1] @ params["w_c2o_t"] + params["b_c2o"]


# --------------------------------- Main ---------------------------------------

if __name__ == "__main__":
    seq_len = 8
    batch = 2
    input_size = 16
    hidden_size = 32
    output_size = 8
    num_layers = 2

    key = jax.random.PRNGKey(0)
    key, kx = jax.random.split(key)
    x = jax.random.normal(kx, (seq_len, batch, input_size), jnp.float32)

    # initHidden(n_batch=batch): zeros of shape (2, num_layers, batch, hidden)
    hidden_cell = jnp.zeros((2, num_layers, batch, hidden_size), jnp.float32)

    params = init_params(key, input_size, hidden_size, output_size, num_layers)

    out = lstm_forward(x, hidden_cell, params, num_layers)
    out = jax.block_until_ready(out)

    ref = ref_forward(x, hidden_cell, params, num_layers)
    assert out.shape == (batch, output_size), out.shape
    assert jnp.allclose(out, ref, rtol=1e-5, atol=1e-5), \
        f"max err {jnp.max(jnp.abs(out - ref))}"

    print("KERNEL_OK")
</pallas_src>

<mosaic_0001>
module attributes {stable_mosaic.version = 11 : i64} {
  func.func @kernel(%arg0: memref<64x16xf32, #tpu.memory_space<vmem>>, %arg1: memref<2x8x32xf32, #tpu.memory_space<vmem>>, %arg2: memref<2x8x32xf32, #tpu.memory_space<vmem>>, %arg3: memref<16x128xf32, #tpu.memory_space<vmem>>, %arg4: memref<32x128xf32, #tpu.memory_space<vmem>>, %arg5: memref<1x128xf32, #tpu.memory_space<vmem>>, %arg6: memref<32x128xf32, #tpu.memory_space<vmem>>, %arg7: memref<32x128xf32, #tpu.memory_space<vmem>>, %arg8: memref<1x128xf32, #tpu.memory_space<vmem>>, %arg9: memref<32x8xf32, #tpu.memory_space<vmem>>, %arg10: memref<1x8xf32, #tpu.memory_space<vmem>>, %arg11: memref<8x8xf32, #tpu.memory_space<vmem>>, %arg12: memref<64x32xf32, #tpu.memory_space<vmem>>, %arg13: memref<64x128xf32, #tpu.memory_space<vmem>>) attributes {dimension_semantics = [], scalar_prefetch = 0 : i64, scratch_operands = 2 : i64, tpu.core_type = #tpu.core_type<tc>} {
    %c0 = arith.constant 0 : index
    %c0_0 = arith.constant 0 : index
    %0 = vector.load %arg3[%c0, %c0_0] : memref<16x128xf32, #tpu.memory_space<vmem>>, vector<16x128xf32>
    %c0_1 = arith.constant 0 : index
    %c0_2 = arith.constant 0 : index
    %1 = vector.load %arg4[%c0_1, %c0_2] : memref<32x128xf32, #tpu.memory_space<vmem>>, vector<32x128xf32>
    %c0_3 = arith.constant 0 : index
    %c0_4 = arith.constant 0 : index
    %2 = vector.load %arg5[%c0_3, %c0_4] : memref<1x128xf32, #tpu.memory_space<vmem>>, vector<1x128xf32>
    %c0_5 = arith.constant 0 : index
    %c0_6 = arith.constant 0 : index
    %3 = vector.load %arg0[%c0_5, %c0_6] : memref<64x16xf32, #tpu.memory_space<vmem>>, vector<64x16xf32>
    %4 = vector.shape_cast %2 : vector<1x128xf32> to vector<1x128xf32>
    %5 = vector.broadcast %4 : vector<1x128xf32> to vector<64x128xf32>
    %cst = arith.constant dense<0.000000e+00> : vector<64x128xf32>
    %6 = tpu.matmul %3, %0, %cst {dimension_numbers = #tpu.dot_dimension_numbers<[1], [0], [0], [1], [0, 0, 1, 1], [], []>} : vector<64x16xf32>, vector<16x128xf32>, vector<64x128xf32> -> vector<64x128xf32>
    %7 = arith.addf %6, %5 : vector<64x128xf32>
    %c0_7 = arith.constant 0 : index
    %c0_8 = arith.constant 0 : index
    %8 = vector.load %arg13[%c0_7, %c0_8] : memref<64x128xf32, #tpu.memory_space<vmem>>, vector<64x128xf32>
    tpu.vector_store %arg13[%c0_7, %c0_8], %7 {strides = array<i32>} : memref<64x128xf32, #tpu.memory_space<vmem>>, vector<64x128xf32>,
    %c0_9 = arith.constant 0 : index
    %c0_10 = arith.constant 0 : index
    %c0_11 = arith.constant 0 : index
    %9 = vector.load %arg1[%c0_9, %c0_10, %c0_11] : memref<2x8x32xf32, #tpu.memory_space<vmem>>, vector<1x8x32xf32>
    %10 = vector.shape_cast %9 : vector<1x8x32xf32> to vector<8x32xf32>
    %c0_12 = arith.constant 0 : index
    %c0_13 = arith.constant 0 : index
    %c0_14 = arith.constant 0 : index
    %11 = vector.load %arg2[%c0_12, %c0_13, %c0_14] : memref<2x8x32xf32, #tpu.memory_space<vmem>>, vector<1x8x32xf32>
    %12 = vector.shape_cast %11 : vector<1x8x32xf32> to vector<8x32xf32>
    %c0_15 = arith.constant 0 : index
    %c0_16 = arith.constant 0 : index
    %13 = vector.load %arg13[%c0_15, %c0_16] : memref<64x128xf32, #tpu.memory_space<vmem>>, vector<8x128xf32>
    %cst_17 = arith.constant dense<0.000000e+00> : vector<8x128xf32>
    %14 = tpu.matmul %10, %1, %cst_17 {dimension_numbers = #tpu.dot_dimension_numbers<[1], [0], [0], [1], [0, 0, 1, 1], [], []>} : vector<8x32xf32>, vector<32x128xf32>, vector<8x128xf32> -> vector<8x128xf32>
    %15 = arith.addf %13, %14 : vector<8x128xf32>
    %16 = arith.negf %15 : vector<8x128xf32>
    %17 = math.exp %16 : vector<8x128xf32>
    %cst_18 = arith.constant 1.000000e+00 : f32
    %18 = vector.broadcast %cst_18 : f32 to vector<8x128xf32>
    %19 = arith.addf %18, %17 : vector<8x128xf32>
    %20 = arith.divf %18, %19 : vector<8x128xf32>
    %21 = math.tanh %15 : vector<8x128xf32>
    %22 = vector.extract_strided_slice %20 {offsets = [0, 0], sizes = [8, 32], strides = [1, 1]} : vector<8x128xf32> to vector<8x32xf32>
    %23 = vector.extract_strided_slice %20 {offsets = [0, 32], sizes = [8, 32], strides = [1, 1]} : vector<8x128xf32> to vector<8x32xf32>
    %24 = vector.extract_strided_slice %21 {offsets = [0, 64], sizes = [8, 32], strides = [1, 1]} : vector<8x128xf32> to vector<8x32xf32>
    %25 = vector.extract_strided_slice %20 {offsets = [0, 96], sizes = [8, 32], strides = [1, 1]} : vector<8x128xf32> to vector<8x32xf32>
    %26 = arith.mulf %23, %12 : vector<8x32xf32>
    %27 = arith.mulf %22, %24 : vector<8x32xf32>
    %28 = arith.addf %26, %27 : vector<8x32xf32>
    %29 = math.tanh %28 : vector<8x32xf32>
    %30 = arith.mulf %25, %29 : vector<8x32xf32>
    %c0_19 = arith.constant 0 : index
    %c0_20 = arith.constant 0 : index
    %31 = vector.load %arg12[%c0_19, %c0_20] : memref<64x32xf32, #tpu.memory_space<vmem>>, vector<8x32xf32>
    tpu.vector_store %arg12[%c0_19, %c0_20], %30 {strides = array<i32>} : memref<64x32xf32, #tpu.memory_space<vmem>>, vector<8x32xf32>,
    %c8 = arith.constant 8 : index
    %c0_21 = arith.constant 0 : index
    %32 = vector.load %arg13[%c8, %c0_21] : memref<64x128xf32, #tpu.memory_space<vmem>>, vector<8x128xf32>
    %cst_22 = arith.constant dense<0.000000e+00> : vector<8x128xf32>
    %33 = tpu.matmul %30, %1, %cst_22 {dimension_numbers = #tpu.dot_dimension_numbers<[1], [0], [0], [1], [0, 0, 1, 1], [], []>} : vector<8x32xf32>, vector<32x128xf32>, vector<8x128xf32> -> vector<8x128xf32>
    %34 = arith.addf %32, %33 : vector<8x128xf32>
    %35 = arith.negf %34 : vector<8x128xf32>
    %36 = math.exp %35 : vector<8x128xf32>
    %cst_23 = arith.constant 1.000000e+00 : f32
    %37 = vector.broadcast %cst_23 : f32 to vector<8x128xf32>
    %38 = arith.addf %37, %36 : vector<8x128xf32>
    %39 = arith.divf %37, %38 : vector<8x128xf32>
    %40 = math.tanh %34 : vector<8x128xf32>
    %41 = vector.extract_strided_slice %39 {offsets = [0, 0], sizes = [8, 32], strides = [1, 1]} : vector<8x128xf32> to vector<8x32xf32>
    %42 = vector.extract_strided_slice %39 {offsets = [0, 32], sizes = [8, 32], strides = [1, 1]} : vector<8x128xf32> to vector<8x32xf32>
    %43 = vector.extract_strided_slice %40 {offsets = [0, 64], sizes = [8, 32], strides = [1, 1]} : vector<8x128xf32> to vector<8x32xf32>
    %44 = vector.extract_strided_slice %39 {offsets = [0, 96], sizes = [8, 32], strides = [1, 1]} : vector<8x128xf32> to vector<8x32xf32>
    %45 = arith.mulf %42, %28 : vector<8x32xf32>
    %46 = arith.mulf %41, %43 : vector<8x32xf32>
    %47 = arith.addf %45, %46 : vector<8x32xf32>
    %48 = math.tanh %47 : vector<8x32xf32>
    %49 = arith.mulf %44, %48 : vector<8x32xf32>
    %c8_24 = arith.constant 8 : index
    %c0_25 = arith.constant 0 : index
    %50 = vector.load %arg12[%c8_24, %c0_25] : memref<64x32xf32, #tpu.memory_space<vmem>>, vector<8x32xf32>
    tpu.vector_store %arg12[%c8_24, %c0_25], %49 {strides = array<i32>} : memref<64x32xf32, #tpu.memory_space<vmem>>, vector<8x32xf32>,
    %c16 = arith.constant 16 : index
    %c0_26 = arith.constant 0 : index
    %51 = vector.load %arg13[%c16, %c0_26] : memref<64x128xf32, #tpu.memory_space<vmem>>, vector<8x128xf32>
    %cst_27 = arith.constant dense<0.000000e+00> : vector<8x128xf32>
    %52 = tpu.matmul %49, %1, %cst_27 {dimension_numbers = #tpu.dot_dimension_numbers<[1], [0], [0], [1], [0, 0, 1, 1], [], []>} : vector<8x32xf32>, vector<32x128xf32>, vector<8x128xf32> -> vector<8x128xf32>
    %53 = arith.addf %51, %52 : vector<8x128xf32>
    %54 = arith.negf %53 : vector<8x128xf32>
    %55 = math.exp %54 : vector<8x128xf32>
    %cst_28 = arith.constant 1.000000e+00 : f32
    %56 = vector.broadcast %cst_28 : f32 to vector<8x128xf32>
    %57 = arith.addf %56, %55 : vector<8x128xf32>
    %58 = arith.divf %56, %57 : vector<8x128xf32>
    %59 = math.tanh %53 : vector<8x128xf32>
    %60 = vector.extract_strided_slice %58 {offsets = [0, 0], sizes = [8, 32], strides = [1, 1]} : vector<8x128xf32> to vector<8x32xf32>
    %61 = vector.extract_strided_slice %58 {offsets = [0, 32], sizes = [8, 32], strides = [1, 1]} : vector<8x128xf32> to vector<8x32xf32>
    %62 = vector.extract_strided_slice %59 {offsets = [0, 64], sizes = [8, 32], strides = [1, 1]} : vector<8x128xf32> to vector<8x32xf32>
    %63 = vector.extract_strided_slice %58 {offsets = [0, 96], sizes = [8, 32], strides = [1, 1]} : vector<8x128xf32> to vector<8x32xf32>
    %64 = arith.mulf %61, %47 : vector<8x32xf32>
    %65 = arith.mulf %60, %62 : vector<8x32xf32>
    %66 = arith.addf %64, %65 : vector<8x32xf32>
    %67 = math.tanh %66 : vector<8x32xf32>
    %68 = arith.mulf %63, %67 : vector<8x32xf32>
    %c16_29 = arith.constant 16 : index
    %c0_30 = arith.constant 0 : index
    %69 = vector.load %arg12[%c16_29, %c0_30] : memref<64x32xf32, #tpu.memory_space<vmem>>, vector<8x32xf32>
    tpu.vector_store %arg12[%c16_29, %c0_30], %68 {strides = array<i32>} : memref<64x32xf32, #tpu.memory_space<vmem>>, vector<8x32xf32>,
    %c24 = arith.constant 24 : index
    %c0_31 = arith.constant 0 : index
    %70 = vector.load %arg13[%c24, %c0_31] : memref<64x128xf32, #tpu.memory_space<vmem>>, vector<8x128xf32>
    %cst_32 = arith.constant dense<0.000000e+00> : vector<8x128xf32>
    %71 = tpu.matmul %68, %1, %cst_32 {dimension_numbers = #tpu.dot_dimension_numbers<[1], [0], [0], [1], [0, 0, 1, 1], [], []>} : vector<8x32xf32>, vector<32x128xf32>, vector<8x128xf32> -> vector<8x128xf32>
    %72 = arith.addf %70, %71 : vector<8x128xf32>
    %73 = arith.negf %72 : vector<8x128xf32>
    %74 = math.exp %73 : vector<8x128xf32>
    %cst_33 = arith.constant 1.000000e+00 : f32
    %75 = vector.broadcast %cst_33 : f32 to vector<8x128xf32>
    %76 = arith.addf %75, %74 : vector<8x128xf32>
    %77 = arith.divf %75, %76 : vector<8x128xf32>
    %78 = math.tanh %72 : vector<8x128xf32>
    %79 = vector.extract_strided_slice %77 {offsets = [0, 0], sizes = [8, 32], strides = [1, 1]} : vector<8x128xf32> to vector<8x32xf32>
    %80 = vector.extract_strided_slice %77 {offsets = [0, 32], sizes = [8, 32], strides = [1, 1]} : vector<8x128xf32> to vector<8x32xf32>
    %81 = vector.extract_strided_slice %78 {offsets = [0, 64], sizes = [8, 32], strides = [1, 1]} : vector<8x128xf32> to vector<8x32xf32>
    %82 = vector.extract_strided_slice %77 {offsets = [0, 96], sizes = [8, 32], strides = [1, 1]} : vector<8x128xf32> to vector<8x32xf32>
    %83 = arith.mulf %80, %66 : vector<8x32xf32>
    %84 = arith.mulf %79, %81 : vector<8x32xf32>
    %85 = arith.addf %83, %84 : vector<8x32xf32>
    %86 = math.tanh %85 : vector<8x32xf32>
    %87 = arith.mulf %82, %86 : vector<8x32xf32>
    %c24_34 = arith.constant 24 : index
    %c0_35 = arith.constant 0 : index
    %88 = vector.load %arg12[%c24_34, %c0_35] : memref<64x32xf32, #tpu.memory_space<vmem>>, vector<8x32xf32>
    tpu.vector_store %arg12[%c24_34, %c0_35], %87 {strides = array<i32>} : memref<64x32xf32, #tpu.memory_space<vmem>>, vector<8x32xf32>,
    %c32 = arith.constant 32 : index
    %c0_36 = arith.constant 0 : index
    %89 = vector.load %arg13[%c32, %c0_36] : memref<64x128xf32, #tpu.memory_space<vmem>>, vector<8x128xf32>
    %cst_37 = arith.constant dense<0.000000e+00> : vector<8x128xf32>
    %90 = tpu.matmul %87, %1, %cst_37 {dimension_numbers = #tpu.dot_dimension_numbers<[1], [0], [0], [1], [0, 0, 1, 1], [], []>} : vector<8x32xf32>, vector<32x128xf32>, vector<8x128xf32> -> vector<8x128xf32>
    %91 = arith.addf %89, %90 : vector<8x128xf32>
    %92 = arith.negf %91 : vector<8x128xf32>
    %93 = math.exp %92 : vector<8x128xf32>
    %cst_38 = arith.constant 1.000000e+00 : f32
    %94 = vector.broadcast %cst_38 : f32 to vector<8x128xf32>
    %95 = arith.addf %94, %93 : vector<8x128xf32>
    %96 = arith.divf %94, %95 : vector<8x128xf32>
    %97 = math.tanh %91 : vector<8x128xf32>
    %98 = vector.extract_strided_slice %96 {offsets = [0, 0], sizes = [8, 32], strides = [1, 1]} : vector<8x128xf32> to vector<8x32xf32>
    %99 = vector.extract_strided_slice %96 {offsets = [0, 32], sizes = [8, 32], strides = [1, 1]} : vector<8x128xf32> to vector<8x32xf32>
    %100 = vector.extract_strided_slice %97 {offsets = [0, 64], sizes = [8, 32], strides = [1, 1]} : vector<8x128xf32> to vector<8x32xf32>
    %101 = vector.extract_strided_slice %96 {offsets = [0, 96], sizes = [8, 32], strides = [1, 1]} : vector<8x128xf32> to vector<8x32xf32>
    %102 = arith.mulf %99, %85 : vector<8x32xf32>
    %103 = arith.mulf %98, %100 : vector<8x32xf32>
    %104 = arith.addf %102, %103 : vector<8x32xf32>
    %105 = math.tanh %104 : vector<8x32xf32>
    %106 = arith.mulf %101, %105 : vector<8x32xf32>
    %c32_39 = arith.constant 32 : index
    %c0_40 = arith.constant 0 : index
    %107 = vector.load %arg12[%c32_39, %c0_40] : memref<64x32xf32, #tpu.memory_space<vmem>>, vector<8x32xf32>
    tpu.vector_store %arg12[%c32_39, %c0_40], %106 {strides = array<i32>} : memref<64x32xf32, #tpu.memory_space<vmem>>, vector<8x32xf32>,
    %c40 = arith.constant 40 : index
    %c0_41 = arith.constant 0 : index
    %108 = vector.load %arg13[%c40, %c0_41] : memref<64x128xf32, #tpu.memory_space<vmem>>, vector<8x128xf32>
    %cst_42 = arith.constant dense<0.000000e+00> : vector<8x128xf32>
    %109 = tpu.matmul %106, %1, %cst_42 {dimension_numbers = #tpu.dot_dimension_numbers<[1], [0], [0], [1], [0, 0, 1, 1], [], []>} : vector<8x32xf32>, vector<32x128xf32>, vector<8x128xf32> -> vector<8x128xf32>
    %110 = arith.addf %108, %109 : vector<8x128xf32>
    %111 = arith.negf %110 : vector<8x128xf32>
    %112 = math.exp %111 : vector<8x128xf32>
    %cst_43 = arith.constant 1.000000e+00 : f32
    %113 = vector.broadcast %cst_43 : f32 to vector<8x128xf32>
    %114 = arith.addf %113, %112 : vector<8x128xf32>
    %115 = arith.divf %113, %114 : vector<8x128xf32>
    %116 = math.tanh %110 : vector<8x128xf32>
    %117 = vector.extract_strided_slice %115 {offsets = [0, 0], sizes = [8, 32], strides = [1, 1]} : vector<8x128xf32> to vector<8x32xf32>
    %118 = vector.extract_strided_slice %115 {offsets = [0, 32], sizes = [8, 32], strides = [1, 1]} : vector<8x128xf32> to vector<8x32xf32>
    %119 = vector.extract_strided_slice %116 {offsets = [0, 64], sizes = [8, 32], strides = [1, 1]} : vector<8x128xf32> to vector<8x32xf32>
    %120 = vector.extract_strided_slice %115 {offsets = [0, 96], sizes = [8, 32], strides = [1, 1]} : vector<8x128xf32> to vector<8x32xf32>
    %121 = arith.mulf %118, %104 : vector<8x32xf32>
    %122 = arith.mulf %117, %119 : vector<8x32xf32>
    %123 = arith.addf %121, %122 : vector<8x32xf32>
    %124 = math.tanh %123 : vector<8x32xf32>
    %125 = arith.mulf %120, %124 : vector<8x32xf32>
    %c40_44 = arith.constant 40 : index
    %c0_45 = arith.constant 0 : index
    %126 = vector.load %arg12[%c40_44, %c0_45] : memref<64x32xf32, #tpu.memory_space<vmem>>, vector<8x32xf32>
    tpu.vector_store %arg12[%c40_44, %c0_45], %125 {strides = array<i32>} : memref<64x32xf32, #tpu.memory_space<vmem>>, vector<8x32xf32>,
    %c48 = arith.constant 48 : index
    %c0_46 = arith.constant 0 : index
    %127 = vector.load %arg13[%c48, %c0_46] : memref<64x128xf32, #tpu.memory_space<vmem>>, vector<8x128xf32>
    %cst_47 = arith.constant dense<0.000000e+00> : vector<8x128xf32>
    %128 = tpu.matmul %125, %1, %cst_47 {dimension_numbers = #tpu.dot_dimension_numbers<[1], [0], [0], [1], [0, 0, 1, 1], [], []>} : vector<8x32xf32>, vector<32x128xf32>, vector<8x128xf32> -> vector<8x128xf32>
    %129 = arith.addf %127, %128 : vector<8x128xf32>
    %130 = arith.negf %129 : vector<8x128xf32>
    %131 = math.exp %130 : vector<8x128xf32>
    %cst_48 = arith.constant 1.000000e+00 : f32
    %132 = vector.broadcast %cst_48 : f32 to vector<8x128xf32>
    %133 = arith.addf %132, %131 : vector<8x128xf32>
    %134 = arith.divf %132, %133 : vector<8x128xf32>
    %135 = math.tanh %129 : vector<8x128xf32>
    %136 = vector.extract_strided_slice %134 {offsets = [0, 0], sizes = [8, 32], strides = [1, 1]} : vector<8x128xf32> to vector<8x32xf32>
    %137 = vector.extract_strided_slice %134 {offsets = [0, 32], sizes = [8, 32], strides = [1, 1]} : vector<8x128xf32> to vector<8x32xf32>
    %138 = vector.extract_strided_slice %135 {offsets = [0, 64], sizes = [8, 32], strides = [1, 1]} : vector<8x128xf32> to vector<8x32xf32>
    %139 = vector.extract_strided_slice %134 {offsets = [0, 96], sizes = [8, 32], strides = [1, 1]} : vector<8x128xf32> to vector<8x32xf32>
    %140 = arith.mulf %137, %123 : vector<8x32xf32>
    %141 = arith.mulf %136, %138 : vector<8x32xf32>
    %142 = arith.addf %140, %141 : vector<8x32xf32>
    %143 = math.tanh %142 : vector<8x32xf32>
    %144 = arith.mulf %139, %143 : vector<8x32xf32>
    %c48_49 = arith.constant 48 : index
    %c0_50 = arith.constant 0 : index
    %145 = vector.load %arg12[%c48_49, %c0_50] : memref<64x32xf32, #tpu.memory_space<vmem>>, vector<8x32xf32>
    tpu.vector_store %arg12[%c48_49, %c0_50], %144 {strides = array<i32>} : memref<64x32xf32, #tpu.memory_space<vmem>>, vector<8x32xf32>,
    %c56 = arith.constant 56 : index
    %c0_51 = arith.constant 0 : index
    %146 = vector.load %arg13[%c56, %c0_51] : memref<64x128xf32, #tpu.memory_space<vmem>>, vector<8x128xf32>
    %cst_52 = arith.constant dense<0.000000e+00> : vector<8x128xf32>
    %147 = tpu.matmul %144, %1, %cst_52 {dimension_numbers = #tpu.dot_dimension_numbers<[1], [0], [0], [1], [0, 0, 1, 1], [], []>} : vector<8x32xf32>, vector<32x128xf32>, vector<8x128xf32> -> vector<8x128xf32>
    %148 = arith.addf %146, %147 : vector<8x128xf32>
    %149 = arith.negf %148 : vector<8x128xf32>
    %150 = math.exp %149 : vector<8x128xf32>
    %cst_53 = arith.constant 1.000000e+00 : f32
    %151 = vector.broadcast %cst_53 : f32 to vector<8x128xf32>
    %152 = arith.addf %151, %150 : vector<8x128xf32>
    %153 = arith.divf %151, %152 : vector<8x128xf32>
    %154 = math.tanh %148 : vector<8x128xf32>
    %155 = vector.extract_strided_slice %153 {offsets = [0, 0], sizes = [8, 32], strides = [1, 1]} : vector<8x128xf32> to vector<8x32xf32>
    %156 = vector.extract_strided_slice %153 {offsets = [0, 32], sizes = [8, 32], strides = [1, 1]} : vector<8x128xf32> to vector<8x32xf32>
    %157 = vector.extract_strided_slice %154 {offsets = [0, 64], sizes = [8, 32], strides = [1, 1]} : vector<8x128xf32> to vector<8x32xf32>
    %158 = vector.extract_strided_slice %153 {offsets = [0, 96], sizes = [8, 32], strides = [1, 1]} : vector<8x128xf32> to vector<8x32xf32>
    %159 = arith.mulf %156, %142 : vector<8x32xf32>
    %160 = arith.mulf %155, %157 : vector<8x32xf32>
    %161 = arith.addf %159, %160 : vector<8x32xf32>
    %162 = math.tanh %161 : vector<8x32xf32>
    %163 = arith.mulf %158, %162 : vector<8x32xf32>
    %c56_54 = arith.constant 56 : index
    %c0_55 = arith.constant 0 : index
    %164 = vector.load %arg12[%c56_54, %c0_55] : memref<64x32xf32, #tpu.memory_space<vmem>>, vector<8x32xf32>
    tpu.vector_store %arg12[%c56_54, %c0_55], %163 {strides = array<i32>} : memref<64x32xf32, #tpu.memory_space<vmem>>, vector<8x32xf32>,
    %c0_56 = arith.constant 0 : index
    %c0_57 = arith.constant 0 : index
    %165 = vector.load %arg6[%c0_56, %c0_57] : memref<32x128xf32, #tpu.memory_space<vmem>>, vector<32x128xf32>
    %c0_58 = arith.constant 0 : index
    %c0_59 = arith.constant 0 : index
    %166 = vector.load %arg7[%c0_58, %c0_59] : memref<32x128xf32, #tpu.memory_space<vmem>>, vector<32x128xf32>
    %c0_60 = arith.constant 0 : index
    %c0_61 = arith.constant 0 : index
    %167 = vector.load %arg8[%c0_60, %c0_61] : memref<1x128xf32, #tpu.memory_space<vmem>>, vector<1x128xf32>
    %c0_62 = arith.constant 0 : index
    %c0_63 = arith.constant 0 : index
    %168 = vector.load %arg12[%c0_62, %c0_63] : memref<64x32xf32, #tpu.memory_space<vmem>>, vector<64x32xf32>
    %169 = vector.shape_cast %167 : vector<1x128xf32> to vector<1x128xf32>
    %170 = vector.broadcast %169 : vector<1x128xf32> to vector<64x128xf32>
    %cst_64 = arith.constant dense<0.000000e+00> : vector<64x128xf32>
    %171 = tpu.matmul %168, %165, %cst_64 {dimension_numbers = #tpu.dot_dimension_numbers<[1], [0], [0], [1], [0, 0, 1, 1], [], []>} : vector<64x32xf32>, vector<32x128xf32>, vector<64x128xf32> -> vector<64x128xf32>
    %172 = arith.addf %171, %170 : vector<64x128xf32>
    %c0_65 = arith.constant 0 : index
    %c0_66 = arith.constant 0 : index
    %173 = vector.load %arg13[%c0_65, %c0_66] : memref<64x128xf32, #tpu.memory_space<vmem>>, vector<64x128xf32>
    tpu.vector_store %arg13[%c0_65, %c0_66], %172 {strides = array<i32>} : memref<64x128xf32, #tpu.memory_space<vmem>>, vector<64x128xf32>,
    %c1 = arith.constant 1 : index
    %c0_67 = arith.constant 0 : index
    %c0_68 = arith.constant 0 : index
    %174 = vector.load %arg1[%c1, %c0_67, %c0_68] : memref<2x8x32xf32, #tpu.memory_space<vmem>>, vector<1x8x32xf32>
    %175 = vector.shape_cast %174 : vector<1x8x32xf32> to vector<8x32xf32>
    %c1_69 = arith.constant 1 : index
    %c0_70 = arith.constant 0 : index
    %c0_71 = arith.constant 0 : index
    %176 = vector.load %arg2[%c1_69, %c0_70, %c0_71] : memref<2x8x32xf32, #tpu.memory_space<vmem>>, vector<1x8x32xf32>
    %177 = vector.shape_cast %176 : vector<1x8x32xf32> to vector<8x32xf32>
    %c0_72 = arith.constant 0 : index
    %c0_73 = arith.constant 0 : index
    %178 = vector.load %arg13[%c0_72, %c0_73] : memref<64x128xf32, #tpu.memory_space<vmem>>, vector<8x128xf32>
    %cst_74 = arith.constant dense<0.000000e+00> : vector<8x128xf32>
    %179 = tpu.matmul %175, %166, %cst_74 {dimension_numbers = #tpu.dot_dimension_numbers<[1], [0], [0], [1], [0, 0, 1, 1], [], []>} : vector<8x32xf32>, vector<32x128xf32>, vector<8x128xf32> -> vector<8x128xf32>
    %180 = arith.addf %178, %179 : vector<8x128xf32>
    %181 = arith.negf %180 : vector<8x128xf32>
    %182 = math.exp %181 : vector<8x128xf32>
    %cst_75 = arith.constant 1.000000e+00 : f32
    %183 = vector.broadcast %cst_75 : f32 to vector<8x128xf32>
    %184 = arith.addf %183, %182 : vector<8x128xf32>
    %185 = arith.divf %183, %184 : vector<8x128xf32>
    %186 = math.tanh %180 : vector<8x128xf32>
    %187 = vector.extract_strided_slice %185 {offsets = [0, 0], sizes = [8, 32], strides = [1, 1]} : vector<8x128xf32> to vector<8x32xf32>
    %188 = vector.extract_strided_slice %185 {offsets = [0, 32], sizes = [8, 32], strides = [1, 1]} : vector<8x128xf32> to vector<8x32xf32>
    %189 = vector.extract_strided_slice %186 {offsets = [0, 64], sizes = [8, 32], strides = [1, 1]} : vector<8x128xf32> to vector<8x32xf32>
    %190 = vector.extract_strided_slice %185 {offsets = [0, 96], sizes = [8, 32], strides = [1, 1]} : vector<8x128xf32> to vector<8x32xf32>
    %191 = arith.mulf %188, %177 : vector<8x32xf32>
    %192 = arith.mulf %187, %189 : vector<8x32xf32>
    %193 = arith.addf %191, %192 : vector<8x32xf32>
    %194 = math.tanh %193 : vector<8x32xf32>
    %195 = arith.mulf %190, %194 : vector<8x32xf32>
    %c8_76 = arith.constant 8 : index
    %c0_77 = arith.constant 0 : index
    %196 = vector.load %arg13[%c8_76, %c0_77] : memref<64x128xf32, #tpu.memory_space<vmem>>, vector<8x128xf32>
    %cst_78 = arith.constant dense<0.000000e+00> : vector<8x128xf32>
    %197 = tpu.matmul %195, %166, %cst_78 {dimension_numbers = #tpu.dot_dimension_numbers<[1], [0], [0], [1], [0, 0, 1, 1], [], []>} : vector<8x32xf32>, vector<32x128xf32>, vector<8x128xf32> -> vector<8x128xf32>
    %198 = arith.addf %196, %197 : vector<8x128xf32>
    %199 = arith.negf %198 : vector<8x128xf32>
    %200 = math.exp %199 : vector<8x128xf32>
    %cst_79 = arith.constant 1.000000e+00 : f32
    %201 = vector.broadcast %cst_79 : f32 to vector<8x128xf32>
    %202 = arith.addf %201, %200 : vector<8x128xf32>
    %203 = arith.divf %201, %202 : vector<8x128xf32>
    %204 = math.tanh %198 : vector<8x128xf32>
    %205 = vector.extract_strided_slice %203 {offsets = [0, 0], sizes = [8, 32], strides = [1, 1]} : vector<8x128xf32> to vector<8x32xf32>
    %206 = vector.extract_strided_slice %203 {offsets = [0, 32], sizes = [8, 32], strides = [1, 1]} : vector<8x128xf32> to vector<8x32xf32>
    %207 = vector.extract_strided_slice %204 {offsets = [0, 64], sizes = [8, 32], strides = [1, 1]} : vector<8x128xf32> to vector<8x32xf32>
    %208 = vector.extract_strided_slice %203 {offsets = [0, 96], sizes = [8, 32], strides = [1, 1]} : vector<8x128xf32> to vector<8x32xf32>
    %209 = arith.mulf %206, %193 : vector<8x32xf32>
    %210 = arith.mulf %205, %207 : vector<8x32xf32>
    %211 = arith.addf %209, %210 : vector<8x32xf32>
    %212 = math.tanh %211 : vector<8x32xf32>
    %213 = arith.mulf %208, %212 : vector<8x32xf32>
    %c16_80 = arith.constant 16 : index
    %c0_81 = arith.constant 0 : index
    %214 = vector.load %arg13[%c16_80, %c0_81] : memref<64x128xf32, #tpu.memory_space<vmem>>, vector<8x128xf32>
    %cst_82 = arith.constant dense<0.000000e+00> : vector<8x128xf32>
    %215 = tpu.matmul %213, %166, %cst_82 {dimension_numbers = #tpu.dot_dimension_numbers<[1], [0], [0], [1], [0, 0, 1, 1], [], []>} : vector<8x32xf32>, vector<32x128xf32>, vector<8x128xf32> -> vector<8x128xf32>
    %216 = arith.addf %214, %215 : vector<8x128xf32>
    %217 = arith.negf %216 : vector<8x128xf32>
    %218 = math.exp %217 : vector<8x128xf32>
    %cst_83 = arith.constant 1.000000e+00 : f32
    %219 = vector.broadcast %cst_83 : f32 to vector<8x128xf32>
    %220 = arith.addf %219, %218 : vector<8x128xf32>
    %221 = arith.divf %219, %220 : vector<8x128xf32>
    %222 = math.tanh %216 : vector<8x128xf32>
    %223 = vector.extract_strided_slice %221 {offsets = [0, 0], sizes = [8, 32], strides = [1, 1]} : vector<8x128xf32> to vector<8x32xf32>
    %224 = vector.extract_strided_slice %221 {offsets = [0, 32], sizes = [8, 32], strides = [1, 1]} : vector<8x128xf32> to vector<8x32xf32>
    %225 = vector.extract_strided_slice %222 {offsets = [0, 64], sizes = [8, 32], strides = [1, 1]} : vector<8x128xf32> to vector<8x32xf32>
    %226 = vector.extract_strided_slice %221 {offsets = [0, 96], sizes = [8, 32], strides = [1, 1]} : vector<8x128xf32> to vector<8x32xf32>
    %227 = arith.mulf %224, %211 : vector<8x32xf32>
    %228 = arith.mulf %223, %225 : vector<8x32xf32>
    %229 = arith.addf %227, %228 : vector<8x32xf32>
    %230 = math.tanh %229 : vector<8x32xf32>
    %231 = arith.mulf %226, %230 : vector<8x32xf32>
    %c24_84 = arith.constant 24 : index
    %c0_85 = arith.constant 0 : index
    %232 = vector.load %arg13[%c24_84, %c0_85] : memref<64x128xf32, #tpu.memory_space<vmem>>, vector<8x128xf32>
    %cst_86 = arith.constant dense<0.000000e+00> : vector<8x128xf32>
    %233 = tpu.matmul %231, %166, %cst_86 {dimension_numbers = #tpu.dot_dimension_numbers<[1], [0], [0], [1], [0, 0, 1, 1], [], []>} : vector<8x32xf32>, vector<32x128xf32>, vector<8x128xf32> -> vector<8x128xf32>
    %234 = arith.addf %232, %233 : vector<8x128xf32>
    %235 = arith.negf %234 : vector<8x128xf32>
    %236 = math.exp %235 : vector<8x128xf32>
    %cst_87 = arith.constant 1.000000e+00 : f32
    %237 = vector.broadcast %cst_87 : f32 to vector<8x128xf32>
    %238 = arith.addf %237, %236 : vector<8x128xf32>
    %239 = arith.divf %237, %238 : vector<8x128xf32>
    %240 = math.tanh %234 : vector<8x128xf32>
    %241 = vector.extract_strided_slice %239 {offsets = [0, 0], sizes = [8, 32], strides = [1, 1]} : vector<8x128xf32> to vector<8x32xf32>
    %242 = vector.extract_strided_slice %239 {offsets = [0, 32], sizes = [8, 32], strides = [1, 1]} : vector<8x128xf32> to vector<8x32xf32>
    %243 = vector.extract_strided_slice %240 {offsets = [0, 64], sizes = [8, 32], strides = [1, 1]} : vector<8x128xf32> to vector<8x32xf32>
    %244 = vector.extract_strided_slice %239 {offsets = [0, 96], sizes = [8, 32], strides = [1, 1]} : vector<8x128xf32> to vector<8x32xf32>
    %245 = arith.mulf %242, %229 : vector<8x32xf32>
    %246 = arith.mulf %241, %243 : vector<8x32xf32>
    %247 = arith.addf %245, %246 : vector<8x32xf32>
    %248 = math.tanh %247 : vector<8x32xf32>
    %249 = arith.mulf %244, %248 : vector<8x32xf32>
    %c32_88 = arith.constant 32 : index
    %c0_89 = arith.constant 0 : index
    %250 = vector.load %arg13[%c32_88, %c0_89] : memref<64x128xf32, #tpu.memory_space<vmem>>, vector<8x128xf32>
    %cst_90 = arith.constant dense<0.000000e+00> : vector<8x128xf32>
    %251 = tpu.matmul %249, %166, %cst_90 {dimension_numbers = #tpu.dot_dimension_numbers<[1], [0], [0], [1], [0, 0, 1, 1], [], []>} : vector<8x32xf32>, vector<32x128xf32>, vector<8x128xf32> -> vector<8x128xf32>
    %252 = arith.addf %250, %251 : vector<8x128xf32>
    %253 = arith.negf %252 : vector<8x128xf32>
    %254 = math.exp %253 : vector<8x128xf32>
    %cst_91 = arith.constant 1.000000e+00 : f32
    %255 = vector.broadcast %cst_91 : f32 to vector<8x128xf32>
    %256 = arith.addf %255, %254 : vector<8x128xf32>
    %257 = arith.divf %255, %256 : vector<8x128xf32>
    %258 = math.tanh %252 : vector<8x128xf32>
    %259 = vector.extract_strided_slice %257 {offsets = [0, 0], sizes = [8, 32], strides = [1, 1]} : vector<8x128xf32> to vector<8x32xf32>
    %260 = vector.extract_strided_slice %257 {offsets = [0, 32], sizes = [8, 32], strides = [1, 1]} : vector<8x128xf32> to vector<8x32xf32>
    %261 = vector.extract_strided_slice %258 {offsets = [0, 64], sizes = [8, 32], strides = [1, 1]} : vector<8x128xf32> to vector<8x32xf32>
    %262 = vector.extract_strided_slice %257 {offsets = [0, 96], sizes = [8, 32], strides = [1, 1]} : vector<8x128xf32> to vector<8x32xf32>
    %263 = arith.mulf %260, %247 : vector<8x32xf32>
    %264 = arith.mulf %259, %261 : vector<8x32xf32>
    %265 = arith.addf %263, %264 : vector<8x32xf32>
    %266 = math.tanh %265 : vector<8x32xf32>
    %267 = arith.mulf %262, %266 : vector<8x32xf32>
    %c40_92 = arith.constant 40 : index
    %c0_93 = arith.constant 0 : index
    %268 = vector.load %arg13[%c40_92, %c0_93] : memref<64x128xf32, #tpu.memory_space<vmem>>, vector<8x128xf32>
    %cst_94 = arith.constant dense<0.000000e+00> : vector<8x128xf32>
    %269 = tpu.matmul %267, %166, %cst_94 {dimension_numbers = #tpu.dot_dimension_numbers<[1], [0], [0], [1], [0, 0, 1, 1], [], []>} : vector<8x32xf32>, vector<32x128xf32>, vector<8x128xf32> -> vector<8x128xf32>
    %270 = arith.addf %268, %269 : vector<8x128xf32>
    %271 = arith.negf %270 : vector<8x128xf32>
    %272 = math.exp %271 : vector<8x128xf32>
    %cst_95 = arith.constant 1.000000e+00 : f32
    %273 = vector.broadcast %cst_95 : f32 to vector<8x128xf32>
    %274 = arith.addf %273, %272 : vector<8x128xf32>
    %275 = arith.divf %273, %274 : vector<8x128xf32>
    %276 = math.tanh %270 : vector<8x128xf32>
    %277 = vector.extract_strided_slice %275 {offsets = [0, 0], sizes = [8, 32], strides = [1, 1]} : vector<8x128xf32> to vector<8x32xf32>
    %278 = vector.extract_strided_slice %275 {offsets = [0, 32], sizes = [8, 32], strides = [1, 1]} : vector<8x128xf32> to vector<8x32xf32>
    %279 = vector.extract_strided_slice %276 {offsets = [0, 64], sizes = [8, 32], strides = [1, 1]} : vector<8x128xf32> to vector<8x32xf32>
    %280 = vector.extract_strided_slice %275 {offsets = [0, 96], sizes = [8, 32], strides = [1, 1]} : vector<8x128xf32> to vector<8x32xf32>
    %281 = arith.mulf %278, %265 : vector<8x32xf32>
    %282 = arith.mulf %277, %279 : vector<8x32xf32>
    %283 = arith.addf %281, %282 : vector<8x32xf32>
    %284 = math.tanh %283 : vector<8x32xf32>
    %285 = arith.mulf %280, %284 : vector<8x32xf32>
    %c48_96 = arith.constant 48 : index
    %c0_97 = arith.constant 0 : index
    %286 = vector.load %arg13[%c48_96, %c0_97] : memref<64x128xf32, #tpu.memory_space<vmem>>, vector<8x128xf32>
    %cst_98 = arith.constant dense<0.000000e+00> : vector<8x128xf32>
    %287 = tpu.matmul %285, %166, %cst_98 {dimension_numbers = #tpu.dot_dimension_numbers<[1], [0], [0], [1], [0, 0, 1, 1], [], []>} : vector<8x32xf32>, vector<32x128xf32>, vector<8x128xf32> -> vector<8x128xf32>
    %288 = arith.addf %286, %287 : vector<8x128xf32>
    %289 = arith.negf %288 : vector<8x128xf32>
    %290 = math.exp %289 : vector<8x128xf32>
    %cst_99 = arith.constant 1.000000e+00 : f32
    %291 = vector.broadcast %cst_99 : f32 to vector<8x128xf32>
    %292 = arith.addf %291, %290 : vector<8x128xf32>
    %293 = arith.divf %291, %292 : vector<8x128xf32>
    %294 = math.tanh %288 : vector<8x128xf32>
    %295 = vector.extract_strided_slice %293 {offsets = [0, 0], sizes = [8, 32], strides = [1, 1]} : vector<8x128xf32> to vector<8x32xf32>
    %296 = vector.extract_strided_slice %293 {offsets = [0, 32], sizes = [8, 32], strides = [1, 1]} : vector<8x128xf32> to vector<8x32xf32>
    %297 = vector.extract_strided_slice %294 {offsets = [0, 64], sizes = [8, 32], strides = [1, 1]} : vector<8x128xf32> to vector<8x32xf32>
    %298 = vector.extract_strided_slice %293 {offsets = [0, 96], sizes = [8, 32], strides = [1, 1]} : vector<8x128xf32> to vector<8x32xf32>
    %299 = arith.mulf %296, %283 : vector<8x32xf32>
    %300 = arith.mulf %295, %297 : vector<8x32xf32>
    %301 = arith.addf %299, %300 : vector<8x32xf32>
    %302 = math.tanh %301 : vector<8x32xf32>
    %303 = arith.mulf %298, %302 : vector<8x32xf32>
    %c56_100 = arith.constant 56 : index
    %c0_101 = arith.constant 0 : index
    %304 = vector.load %arg13[%c56_100, %c0_101] : memref<64x128xf32, #tpu.memory_space<vmem>>, vector<8x128xf32>
    %cst_102 = arith.constant dense<0.000000e+00> : vector<8x128xf32>
    %305 = tpu.matmul %303, %166, %cst_102 {dimension_numbers = #tpu.dot_dimension_numbers<[1], [0], [0], [1], [0, 0, 1, 1], [], []>} : vector<8x32xf32>, vector<32x128xf32>, vector<8x128xf32> -> vector<8x128xf32>
    %306 = arith.addf %304, %305 : vector<8x128xf32>
    %307 = arith.negf %306 : vector<8x128xf32>
    %308 = math.exp %307 : vector<8x128xf32>
    %cst_103 = arith.constant 1.000000e+00 : f32
    %309 = vector.broadcast %cst_103 : f32 to vector<8x128xf32>
    %310 = arith.addf %309, %308 : vector<8x128xf32>
    %311 = arith.divf %309, %310 : vector<8x128xf32>
    %312 = math.tanh %306 : vector<8x128xf32>
    %313 = vector.extract_strided_slice %311 {offsets = [0, 0], sizes = [8, 32], strides = [1, 1]} : vector<8x128xf32> to vector<8x32xf32>
    %314 = vector.extract_strided_slice %311 {offsets = [0, 32], sizes = [8, 32], strides = [1, 1]} : vector<8x128xf32> to vector<8x32xf32>
    %315 = vector.extract_strided_slice %312 {offsets = [0, 64], sizes = [8, 32], strides = [1, 1]} : vector<8x128xf32> to vector<8x32xf32>
    %316 = vector.extract_strided_slice %311 {offsets = [0, 96], sizes = [8, 32], strides = [1, 1]} : vector<8x128xf32> to vector<8x32xf32>
    %317 = arith.mulf %314, %301 : vector<8x32xf32>
    %318 = arith.mulf %313, %315 : vector<8x32xf32>
    %319 = arith.addf %317, %318 : vector<8x32xf32>
    %320 = math.tanh %319 : vector<8x32xf32>
    %321 = arith.mulf %316, %320 : vector<8x32xf32>
    %c0_104 = arith.constant 0 : index
    %c0_105 = arith.constant 0 : index
    %322 = vector.load %arg9[%c0_104, %c0_105] : memref<32x8xf32, #tpu.memory_space<vmem>>, vector<32x8xf32>
    %cst_106 = arith.constant dense<0.000000e+00> : vector<8x8xf32>
    %323 = tpu.matmul %321, %322, %cst_106 {dimension_numbers = #tpu.dot_dimension_numbers<[1], [0], [0], [1], [0, 0, 1, 1], [], []>} : vector<8x32xf32>, vector<32x8xf32>, vector<8x8xf32> -> vector<8x8xf32>
    %c0_107 = arith.constant 0 : index
    %c0_108 = arith.constant 0 : index
    %324 = vector.load %arg10[%c0_107, %c0_108] : memref<1x8xf32, #tpu.memory_space<vmem>>, vector<1x8xf32>
    %325 = vector.broadcast %324 : vector<1x8xf32> to vector<8x8xf32>
    %326 = arith.addf %323, %325 : vector<8x8xf32>
    %c0_109 = arith.constant 0 : index
    %c0_110 = arith.constant 0 : index
    %327 = vector.load %arg11[%c0_109, %c0_110] : memref<8x8xf32, #tpu.memory_space<vmem>>, vector<8x8xf32>
    tpu.vector_store %arg11[%c0_109, %c0_110], %326 {strides = array<i32>} : memref<8x8xf32, #tpu.memory_space<vmem>>, vector<8x8xf32>,
    return
  }
}

</mosaic_0001>

<bundles_post_ra>
// kernel: lstm_forward.1
= control target key start
LH: loop header
LB: loop body
LE: loop exit
PB: predicated region body
PF: predicated region fallthrough
CT: control target
= control target key end

     0   :  { %vm59_vm0 = vcmask 130048   ;;  %v2726_v0 = vmov 0.0|0.0   ;;  %vm2727_vm1 = vmmov 0   ;;  %v2728_v4 = vmov 0.0   ;;  %s2729_s16 = smov 64   ;;  %s2730_s19 = smov 32   ;;  %s3165_s3 = inlined_call_operand.vmem [shape: f32[16,128], index: 3, kind: input, shape index: {}]   ;;  %s3166_s4 = inlined_call_operand.vmem [shape: f32[32,128], index: 4, kind: input, shape index: {}]   ;;  %s3167_s0 = inlined_call_operand.vmem [shape: f32[64,16], index: 0, kind: input, shape index: {}]   ;;  %s3168_s1 = inlined_call_operand.vmem [shape: f32[2,8,32], index: 1, kind: input, shape index: {}]   ;;  %s3169_s5 = inlined_call_operand.vmem [shape: f32[1,128], index: 5, kind: input, shape index: {}]   ;;  %s3170_s2 = inlined_call_operand.vmem [shape: f32[2,8,32], index: 2, kind: input, shape index: {}]   ;;  %s3171_s6 = inlined_call_operand.vmem [shape: f32[32,128], index: 6, kind: input, shape index: {}]   ;;  %s3172_s7 = inlined_call_operand.vmem [shape: f32[32,128], index: 7, kind: input, shape index: {}]   ;;  %s3173_s8 = inlined_call_operand.vmem [shape: f32[1,128], index: 8, kind: input, shape index: {}]   ;;  %s3174_s9 = inlined_call_operand.vmem [shape: f32[32,8], index: 9, kind: input, shape index: {}]   ;;  %s3175_s10 = inlined_call_operand.vmem [shape: f32[1,8], index: 10, kind: input, shape index: {}]   ;;  %s3176_s11 = inlined_call_operand.vmem [shape: f32[8,8], index: 11, kind: output, shape index: {}]  }
   0x1   :  { %2483 = vmatprep.subr.bf16.mxu1 %v2726_v0  ;;  %v38_v1 = vld [vmem:[%s3165_s3] sm:$0xff]  ;;  %v39_v2 = vld [vmem:[%s3165_s3 + $0x8] sm:$0xff]  ;;  %2280 = vmatprep.mubr.msk.f32.mxu1 %vm2727_vm1, %v2728_v4  ;;  %v42_v9 = vld [vmem:[%s3166_s4 + $0x10] sm:$0xff]  ;;  %vm200_vm2 = vcmask 261120   ;;  %vm2089_vm3 = vcmask 64512  }
   0x2   :  { %v40_v3 = vld [vmem:[%s3166_s4] sm:$0xff]  ;;  %v2479_v5 = vpack.c.bf16 %v39_v2, %v38_v1  ;;  %v41_v6 = vld [vmem:[%s3166_s4 + $0x8] sm:$0xff]  ;;  %v43_v10 = vld [vmem:[%s3166_s4 + $0x18] sm:$0xff] }
   0x3   :  { %v45_v7 = vld [vmem:[%s3167_s0] sm:$0xff]  ;;  %v2809_v8 = vpack.c.bf16 %v41_v6, %v40_v3  ;;  %v46_v11 = vld [vmem:[%s3167_s0 + $0x8] sm:$0xff]  ;;  %v2822_v12 = vpack.c.bf16 %v43_v10, %v42_v9  ;;  %v47_v51 = vld [vmem:[%s3167_s0 + $0x10] sm:$0xff] }
   0x4   :  { %2260 = vmatprep.mubr.msk.f32.mxu0 %vm59_vm0, %v45_v7  ;;  %2480 = vmatprep.subr.bf16.mxu0 %v2479_v5  ;;  %v197_v13 = vld [vmem:[%s3168_s1] sm:$0xff]  ;;  %v48_v52 = vld [vmem:[%s3167_s0 + $0x18] sm:$0xff]  ;;  %v50_v54 = vld [vmem:[%s3167_s0 + $0x28] sm:$0xff] }
   0x5   :  { %2485 = vmatpush3.bf16.msra.mxu1 %v2809_v8  ;;  %2482 = vmatpush3.bf16.msra.mxu0 %v2479_v5  ;;  %v2846_v14 = vld [vmem:[%s3169_s5] ss:$0 sm:$0xff]  ;;  %v51_v55 = vld [vmem:[%s3167_s0 + $0x30] sm:$0xff]  ;;  %v52_v56 = vld [vmem:[%s3167_s0 + $0x38] sm:$0xff] }
   0x6   :  { %2486 = vmatprep.subr.bf16.mxu1 %v2726_v0  ;;  %2495 = vmatprep.subr.bf16.mxu0 %v2726_v0  ;;  %v198_v22 = vld [vmem:[%s3170_s2] sm:$0xff] }
   0x7   :  { %v49_v53 = vld [vmem:[%s3167_s0 + $0x20] sm:$0xff] }
   0x8   :  { %2261 = vmatmul.mubr.msk.f32.vlgmr.msra.gmra.mrb[0].mxu0 %vm59_vm0, %v46_v11 }
   0x9   :  { %2488 = vmatpush3.bf16.msra.mxu1 %v2822_v12  ;;  %2497 = vmatpush3.bf16.msra.mxu0 %v2809_v8 }
   0xa   :  { %2489 = vmatprep.subr.bf16.mxu1 %v2726_v0  ;;  %2498 = vmatprep.subr.bf16.mxu0 %v2726_v0 }
   0xb   :  { %2263 = vmatprep.mubr.msk.f32.mxu0 %vm59_vm0, %v47_v51 }
   0xc   :  { %2281 = vmatmul.mubr.msk.f32.vlgmr.msra.gmra.mrb[0].mxu1 %vm200_vm2, %v197_v13  ;;  %2264 = vmatmul.mubr.msk.f32.gmra.mrb[2].mxu0 %vm59_vm0, %v48_v52 }
   0xd   :  { %2491 = vmatpush3.bf16.msra.mxu1 %v2809_v8  ;;  %2291 = vmatprep.mubr.msk.f32.mxu1 %vm2727_vm1, %v2728_v4 }
   0xe   :  { %2492 = vmatprep.subr.bf16.mxu1 %v2726_v0  ;;  %2500 = vmatpush3.bf16.msra.mxu0 %v2822_v12 }
   0xf   :  { %2507 = vmatprep.subr.bf16.mxu0 %v2726_v0  ;;  %2266 = vmatprep.mubr.msk.f32.mxu0 %vm59_vm0, %v49_v53 }
  0x10   :  { %2267 = vmatmul.mubr.msk.f32.gmra.mrb[4].mxu0 %vm59_vm0, %v50_v54 }
  0x11   :  { %2494 = vmatpush3.bf16.msra.mxu1 %v2822_v12  ;;  %2269 = vmatprep.mubr.msk.f32.mxu0 %vm59_vm0, %v51_v55 }
  0x12   :  { %2501 = vmatprep.subr.bf16.mxu1 %v2726_v0 }
  0x14   :  { %2270 = vmatmul.mubr.msk.f32.gmra.mrb[6].mxu0 %vm59_vm0, %v52_v56 }
  0x15   :  { %2302 = vmatprep.mubr.msk.f32.mxu0 %vm2727_vm1, %v2728_v4 }
  0xdb   :  { %v2262_v15 = vpop.f32.mrb[0].mxu0 }
  0xdc   :  { %v150_v16 = vpop.f32.mrb[1].mxu0  ;;  %v156_v37 = vadd.f32 %v2262_v15, %v2846_v14 }
  0xdd   :  { %v151_v17 = vadd.f32 %v2846_v14, %v150_v16 }
  0xdf   :  { %v270_v18 = vpop.f32.mrb[0].mxu1  ;;  %v2265_v60 = vpop.f32.mrb[2].mxu0 }
  0xe0   :  { %v274_v19 = vadd.f32 %v270_v18, %v151_v17  ;;  %v2282_v20 = vpop.f32.mrb[1].mxu1  ;;  %v160_v61 = vpop.f32.mrb[3].mxu0 }
  0xe1   :  { %v161_v5 = vadd.f32 %v2846_v14, %v160_v61 }
  0xe2   :  { %2598 = vtanh.f32 %v274_v19  ;;  %v2105_v23 = vmul.f32 -1.442695, %v274_v19 }
  0xe3   :  { %v2896_v62 = vpop.f32.mrb[4].mxu0 }
  0xe4   :  { %2600 = vpow2.f32 %v2105_v23  ;;  %v2898_v63 = vpop.f32.mrb[5].mxu0 }
  0xe7   :  { %v2900_v1 = vpop.f32.mrb[6].mxu0 }
  0xe8   :  { %v2902_v2 = vpop.f32.mrb[7].mxu0 }
  0xec   :  { %v2599_v21 = vpop.eup %2598 }
  0xed   :  { %288 = vrot.lane.b32.xlu0 %v2599_v21, %s2729_s16 }
  0xee   :  { %v2601_v24 = vpop.eup %2600 }
  0xef   :  { %v278_v25 = vadd.f32 1.0, %v2601_v24 }
  0xf1   :  { %283 = vrot.lane.b32.xlu0 %v198_v22, %s2730_s19  ;;  %2602 = vrcp.f32 %v278_v25 }
  0xfb   :  { %v2603_v26 = vpop.eup %2602 }
 0x15f   :  { %v289_v27 = vpop.permute.xlu0 %288 }
 0x160   :  { %v291_v28 = vmul.f32 %v2603_v26, %v289_v27 }
 0x162   :  { %293 = vrot.lane.b32.xlu1 %v291_v28, %s2730_s19 }
 0x163   :  { %v284_v29 = vpop.permute.xlu0 %283 }
 0x164   :  { %v286_v30 = vmul.f32 %v2603_v26, %v284_v29 }
 0x1d4   :  { %v294_v31 = vpop.permute.xlu1 %293 }
 0x1d5   :  { %v296_v32 = vadd.f32 %v294_v31, %v286_v30 }
 0x1d7   :  { %2604 = vtanh.f32 %v296_v32 }
 0x1e1   :  { %v2605_v33 = vpop.eup %2604 }
 0x1e2   :  { %299 = vrot.lane.b32.xlu1 %v2605_v33, %s2729_s16 }
 0x254   :  { %v300_v34 = vpop.permute.xlu1 %299 }
 0x255   :  { %v302_v35 = vmul.f32 %v2603_v26, %v300_v34  ;;  %v166_v26 = vadd.f32 %v2265_v60, %v2846_v14 }
 0x257   :  { %304 = vrot.lane.b32.xlu0 %v302_v35, %s2730_s19 }
 0x2c9   :  { %v305_v36 = vpop.permute.xlu0 %304 }
 0x2ca   :  { %307 = vst.msk [vmem:[#allocation2] sm:$0xff] %vm200_vm2, %v305_v36  ;;  %2292 = vmatmul.mubr.msk.f32.vlgmr.msra.gmra.mrb[2].mxu1 %vm200_vm2, %v305_v36 }
 0x2cb   :  { %2503 = vmatpush3.bf16.msra.mxu1 %v2809_v8  ;;  %2313 = vmatprep.mubr.msk.f32.mxu1 %vm2727_vm1, %v2728_v4 }
 0x2cc   :  { %2504 = vmatprep.subr.bf16.mxu1 %v2726_v0 }
 0x2cf   :  { %2506 = vmatpush3.bf16.msra.mxu1 %v2822_v12 }
 0x2d0   :  { %2513 = vmatprep.subr.bf16.mxu1 %v2726_v0 }
 0x39d   :  { %v377_v38 = vpop.f32.mrb[2].mxu1 }
 0x39e   :  { %v381_v39 = vadd.f32 %v377_v38, %v156_v37  ;;  %v2293_v40 = vpop.f32.mrb[3].mxu1 }
 0x3a0   :  { %2606 = vtanh.f32 %v381_v39  ;;  %v2107_v42 = vmul.f32 -1.442695, %v381_v39 }
 0x3a2   :  { %2608 = vpow2.f32 %v2107_v42 }
 0x3aa   :  { %v2607_v41 = vpop.eup %2606 }
 0x3ab   :  { %391 = vrot.lane.b32.xlu1 %v2607_v41, %s2729_s16 }
 0x3ac   :  { %v2609_v43 = vpop.eup %2608 }
 0x3ad   :  { %v385_v44 = vadd.f32 1.0, %v2609_v43 }
 0x3af   :  { %2610 = vrcp.f32 %v385_v44  ;;  %v171_v44 = vadd.f32 %v2846_v14, %v2898_v63  ;;  %v176_v63 = vadd.f32 %v2896_v62, %v2846_v14 }
 0x3b9   :  { %v2611_v45 = vpop.eup %2610 }
 0x3ba   :  { %v389_v48 = vmul.f32 %v2611_v45, %v296_v32 }
 0x41d   :  { %v392_v46 = vpop.permute.xlu1 %391 }
 0x41e   :  { %v394_v47 = vmul.f32 %v2611_v45, %v392_v46 }
 0x420   :  { %396 = vrot.lane.b32.xlu0 %v394_v47, %s2730_s19 }
 0x492   :  { %v397_v49 = vpop.permute.xlu0 %396 }
 0x493   :  { %v399_v50 = vadd.f32 %v397_v49, %v389_v48 }
 0x495   :  { %2612 = vtanh.f32 %v399_v50 }
 0x49f   :  { %v2613_v57 = vpop.eup %2612 }
 0x4a0   :  { %402 = vrot.lane.b32.xlu1 %v2613_v57, %s2729_s16 }
 0x512   :  { %v403_v58 = vpop.permute.xlu1 %402 }
 0x513   :  { %v405_v59 = vmul.f32 %v2611_v45, %v403_v58 }
 0x515   :  { %407 = vrot.lane.b32.xlu0 %v405_v59, %s2730_s19 }
 0x587   :  { %v408_v3 = vpop.permute.xlu0 %407 }
 0x588   :  { %410 = vst.msk [vmem:[#allocation2 + $0x8] sm:$0xff] %vm200_vm2, %v408_v3  ;;  %2303 = vmatmul.mubr.msk.f32.vlgmr.msra.gmra.mrb[8].mxu0 %vm200_vm2, %v408_v3 }
 0x589   :  { %2509 = vmatpush3.bf16.msra.mxu0 %v2809_v8  ;;  %2324 = vmatprep.mubr.msk.f32.mxu0 %vm2727_vm1, %v2728_v4 }
 0x58a   :  { %2510 = vmatprep.subr.bf16.mxu0 %v2726_v0 }
 0x58d   :  { %2512 = vmatpush3.bf16.msra.mxu0 %v2822_v12 }
 0x58e   :  { %2519 = vmatprep.subr.bf16.mxu0 %v2726_v0 }
 0x65b   :  { %v480_v6 = vpop.f32.mrb[8].mxu0 }
 0x65c   :  { %v484_v7 = vadd.f32 %v480_v6, %v161_v5  ;;  %v2304_v9 = vpop.f32.mrb[9].mxu0 }
 0x65e   :  { %2614 = vtanh.f32 %v484_v7  ;;  %v2109_v11 = vmul.f32 -1.442695, %v484_v7 }
 0x660   :  { %2616 = vpow2.f32 %v2109_v11 }
 0x668   :  { %v2615_v10 = vpop.eup %2614 }
 0x669   :  { %494 = vrot.lane.b32.xlu1 %v2615_v10, %s2729_s16 }
 0x66a   :  { %v2617_v13 = vpop.eup %2616 }
 0x66b   :  { %v488_v15 = vadd.f32 1.0, %v2617_v13 }
 0x66d   :  { %2618 = vrcp.f32 %v488_v15 }
 0x677   :  { %v2619_v16 = vpop.eup %2618 }
 0x678   :  { %v492_v19 = vmul.f32 %v2619_v16, %v399_v50 }
 0x6db   :  { %v495_v17 = vpop.permute.xlu1 %494 }
 0x6dc   :  { %v497_v18 = vmul.f32 %v2619_v16, %v495_v17  ;;  %v1029_v17 = vld [vmem:[%s3171_s6] sm:$0xff] }
 0x6de   :  { %499 = vrot.lane.b32.xlu0 %v497_v18, %s2730_s19  ;;  %v1030_v18 = vld [vmem:[%s3171_s6 + $0x8] sm:$0xff] }
 0x750   :  { %v500_v20 = vpop.permute.xlu0 %499 }
 0x751   :  { %v502_v21 = vadd.f32 %v500_v20, %v492_v19  ;;  %v2531_v19 = vpack.c.bf16 %v1030_v18, %v1029_v17 }
 0x753   :  { %2620 = vtanh.f32 %v502_v21 }
 0x75d   :  { %v2621_v22 = vpop.eup %2620 }
 0x75e   :  { %505 = vrot.lane.b32.xlu1 %v2621_v22, %s2729_s16 }
 0x7d0   :  { %v506_v23 = vpop.permute.xlu1 %505 }
 0x7d1   :  { %v508_v24 = vmul.f32 %v2619_v16, %v506_v23  ;;  %v1031_v23 = vld [vmem:[%s3171_s6 + $0x10] sm:$0xff] }
 0x7d3   :  { %510 = vrot.lane.b32.xlu0 %v508_v24, %s2730_s19  ;;  %v1032_v24 = vld [vmem:[%s3171_s6 + $0x18] sm:$0xff] }
 0x845   :  { %v511_v25 = vpop.permute.xlu0 %510 }
 0x846   :  { %513 = vst.msk [vmem:[#allocation2 + $0x10] sm:$0xff] %vm200_vm2, %v511_v25  ;;  %2314 = vmatmul.mubr.msk.f32.vlgmr.msra.gmra.mrb[4].mxu1 %vm200_vm2, %v511_v25  ;;  %v2535_v25 = vpack.c.bf16 %v1032_v24, %v1031_v23 }
 0x847   :  { %2515 = vmatpush3.bf16.msra.mxu1 %v2809_v8  ;;  %2335 = vmatprep.mubr.msk.f32.mxu1 %vm2727_vm1, %v2728_v4 }
 0x848   :  { %2516 = vmatprep.subr.bf16.mxu1 %v2726_v0 }
 0x84b   :  { %2518 = vmatpush3.bf16.msra.mxu1 %v2822_v12 }
 0x84c   :  { %2525 = vmatprep.subr.bf16.mxu1 %v2726_v0 }
 0x919   :  { %v583_v27 = vpop.f32.mrb[4].mxu1 }
 0x91a   :  { %v587_v28 = vadd.f32 %v583_v27, %v166_v26  ;;  %v2315_v29 = vpop.f32.mrb[5].mxu1  ;;  %v1038_v27 = vld [vmem:[#allocation2] sm:$0xff] }
 0x91b   :  { %v1040_v29 = vld [vmem:[#allocation2 + $0x10] sm:$0xff] }
 0x91c   :  { %2622 = vtanh.f32 %v587_v28  ;;  %v2111_v31 = vmul.f32 -1.442695, %v587_v28  ;;  %v1039_v28 = vld [vmem:[#allocation2 + $0x8] sm:$0xff] }
 0x91e   :  { %2624 = vpow2.f32 %v2111_v31 }
 0x926   :  { %v2623_v30 = vpop.eup %2622 }
 0x927   :  { %597 = vrot.lane.b32.xlu1 %v2623_v30, %s2729_s16 }
 0x928   :  { %v2625_v32 = vpop.eup %2624 }
 0x929   :  { %v591_v33 = vadd.f32 1.0, %v2625_v32 }
 0x92b   :  { %2626 = vrcp.f32 %v591_v33  ;;  %v181_v33 = vadd.f32 %v2846_v14, %v2902_v2 }
 0x935   :  { %v2627_v34 = vpop.eup %2626 }
 0x936   :  { %v595_v37 = vmul.f32 %v2627_v34, %v502_v21 }
 0x999   :  { %v598_v35 = vpop.permute.xlu1 %597 }
 0x99a   :  { %v600_v36 = vmul.f32 %v2627_v34, %v598_v35 }
 0x99c   :  { %602 = vrot.lane.b32.xlu0 %v600_v36, %s2730_s19 }
 0xa0e   :  { %v603_v38 = vpop.permute.xlu0 %602 }
 0xa0f   :  { %v605_v39 = vadd.f32 %v603_v38, %v595_v37 }
 0xa11   :  { %2628 = vtanh.f32 %v605_v39 }
 0xa1b   :  { %v2629_v40 = vpop.eup %2628 }
 0xa1c   :  { %608 = vrot.lane.b32.xlu1 %v2629_v40, %s2729_s16 }
 0xa8e   :  { %v609_v41 = vpop.permute.xlu1 %608 }
 0xa8f   :  { %v611_v42 = vmul.f32 %v2627_v34, %v609_v41 }
 0xa91   :  { %613 = vrot.lane.b32.xlu0 %v611_v42, %s2730_s19 }
 0xb03   :  { %v614_v43 = vpop.permute.xlu0 %613 }
 0xb04   :  { %616 = vst.msk [vmem:[#allocation2 + $0x18] sm:$0xff] %vm200_vm2, %v614_v43  ;;  %2325 = vmatmul.mubr.msk.f32.vlgmr.msra.gmra.mrb[10].mxu0 %vm200_vm2, %v614_v43 }
 0xb05   :  { %2521 = vmatpush3.bf16.msra.mxu0 %v2809_v8  ;;  %2346 = vmatprep.mubr.msk.f32.mxu0 %vm2727_vm1, %v2728_v4 }
 0xb06   :  { %2522 = vmatprep.subr.bf16.mxu0 %v2726_v0 }
 0xb09   :  { %2524 = vmatpush3.bf16.msra.mxu0 %v2822_v12 }
 0xb0a   :  { %2532 = vmatprep.subr.bf16.mxu0 %v2531_v19 }
 0xb0b   :  { %v1041_v30 = vld [vmem:[#allocation2 + $0x18] sm:$0xff] }
 0xbd7   :  { %v686_v45 = vpop.f32.mrb[10].mxu0 }
 0xbd8   :  { %v690_v46 = vadd.f32 %v686_v45, %v171_v44  ;;  %v2326_v47 = vpop.f32.mrb[11].mxu0 }
 0xbda   :  { %2630 = vtanh.f32 %v690_v46  ;;  %v2113_v49 = vmul.f32 -1.442695, %v690_v46 }
 0xbdc   :  { %2632 = vpow2.f32 %v2113_v49 }
 0xbe4   :  { %v2631_v48 = vpop.eup %2630 }
 0xbe5   :  { %700 = vrot.lane.b32.xlu1 %v2631_v48, %s2729_s16 }
 0xbe6   :  { %v2633_v50 = vpop.eup %2632 }
 0xbe7   :  { %v694_v51 = vadd.f32 1.0, %v2633_v50 }
 0xbe9   :  { %2634 = vrcp.f32 %v694_v51 }
 0xbf3   :  { %v2635_v52 = vpop.eup %2634 }
 0xbf4   :  { %v698_v55 = vmul.f32 %v2635_v52, %v605_v39 }
 0xc57   :  { %v701_v53 = vpop.permute.xlu1 %700 }
 0xc58   :  { %v703_v54 = vmul.f32 %v2635_v52, %v701_v53  ;;  %v1033_v53 = vld [vmem:[%s3172_s7] sm:$0xff] }
 0xc5a   :  { %705 = vrot.lane.b32.xlu0 %v703_v54, %s2730_s19  ;;  %v1034_v54 = vld [vmem:[%s3172_s7 + $0x8] sm:$0xff] }
 0xccc   :  { %v706_v56 = vpop.permute.xlu0 %705 }
 0xccd   :  { %v708_v57 = vadd.f32 %v706_v56, %v698_v55  ;;  %v3002_v55 = vpack.c.bf16 %v1034_v54, %v1033_v53  ;;  %v1035_v56 = vld [vmem:[%s3172_s7 + $0x10] sm:$0xff] }
 0xccf   :  { %2636 = vtanh.f32 %v708_v57 }
 0xcd9   :  { %v2637_v58 = vpop.eup %2636 }
 0xcda   :  { %711 = vrot.lane.b32.xlu1 %v2637_v58, %s2729_s16 }
 0xd4c   :  { %v712_v59 = vpop.permute.xlu1 %711 }
 0xd4d   :  { %v714_v60 = vmul.f32 %v2635_v52, %v712_v59 }
 0xd4f   :  { %716 = vrot.lane.b32.xlu0 %v714_v60, %s2730_s19 }
 0xdc1   :  { %v717_v61 = vpop.permute.xlu0 %716 }
 0xdc2   :  { %719 = vst.msk [vmem:[#allocation2 + $0x20] sm:$0xff] %vm200_vm2, %v717_v61  ;;  %2336 = vmatmul.mubr.msk.f32.vlgmr.msra.gmra.mrb[6].mxu1 %vm200_vm2, %v717_v61  ;;  %v2130_v61 = vld [vmem:[%s3170_s2 + $0x8] sm:$0xff] }
 0xdc3   :  { %2527 = vmatpush3.bf16.msra.mxu1 %v2809_v8  ;;  %2357 = vmatprep.mubr.msk.f32.mxu1 %vm2727_vm1, %v2728_v4 }
 0xdc4   :  { %2528 = vmatprep.subr.bf16.mxu1 %v2726_v0 }
 0xdc7   :  { %2530 = vmatpush3.bf16.msra.mxu1 %v2822_v12 }
 0xdc8   :  { %2539 = vmatprep.subr.bf16.mxu1 %v2726_v0 }
 0xdc9   :  { %v1042_v31 = vld [vmem:[#allocation2 + $0x20] sm:$0xff] }
 0xe95   :  { %v789_v3 = vpop.f32.mrb[6].mxu1 }
 0xe96   :  { %v793_v5 = vadd.f32 %v789_v3, %v176_v63  ;;  %v2337_v6 = vpop.f32.mrb[7].mxu1  ;;  %v2129_v3 = vld [vmem:[%s3168_s1 + $0x8] sm:$0xff] }
 0xe97   :  { %v186_v6 = vadd.f32 %v2900_v1, %v2846_v14 }
 0xe98   :  { %2638 = vtanh.f32 %v793_v5  ;;  %v2115_v8 = vmul.f32 -1.442695, %v793_v5 }
 0xe9a   :  { %2640 = vpow2.f32 %v2115_v8 }
 0xea2   :  { %v2639_v7 = vpop.eup %2638 }
 0xea3   :  { %803 = vrot.lane.b32.xlu1 %v2639_v7, %s2729_s16 }
 0xea4   :  { %v2641_v9 = vpop.eup %2640 }
 0xea5   :  { %v797_v10 = vadd.f32 1.0, %v2641_v9 }
 0xea7   :  { %2642 = vrcp.f32 %v797_v10  ;;  %v3045_v10 = vld [vmem:[%s3173_s8] ss:$0 sm:$0xff] }
 0xeb1   :  { %v2643_v11 = vpop.eup %2642 }
 0xeb2   :  { %v801_v15 = vmul.f32 %v2643_v11, %v708_v57  ;;  %v1036_v57 = vld [vmem:[%s3172_s7 + $0x18] sm:$0xff] }
 0xeb3   :  { %v3012_v58 = vpack.c.bf16 %v1036_v57, %v1035_v56 }
 0xf15   :  { %v804_v13 = vpop.permute.xlu1 %803 }
 0xf16   :  { %v806_v12 = vmul.f32 %v2643_v11, %v804_v13 }
 0xf18   :  { %808 = vrot.lane.b32.xlu0 %v806_v12, %s2730_s19 }
 0xf8a   :  { %v809_v16 = vpop.permute.xlu0 %808 }
 0xf8b   :  { %v811_v62 = vadd.f32 %v809_v16, %v801_v15 }
 0xf8d   :  { %2644 = vtanh.f32 %v811_v62 }
 0xf97   :  { %v2645_v20 = vpop.eup %2644 }
 0xf98   :  { %814 = vrot.lane.b32.xlu1 %v2645_v20, %s2729_s16 }
0x100a   :  { %v815_v21 = vpop.permute.xlu1 %814 }
0x100b   :  { %v817_v22 = vmul.f32 %v2643_v11, %v815_v21 }
0x100d   :  { %819 = vrot.lane.b32.xlu0 %v817_v22, %s2730_s19 }
0x107f   :  { %v820_v26 = vpop.permute.xlu0 %819 }
0x1080   :  { %822 = vst.msk [vmem:[#allocation2 + $0x28] sm:$0xff] %vm200_vm2, %v820_v26  ;;  %2347 = vmatmul.mubr.msk.f32.vlgmr.msra.gmra.mrb[12].mxu0 %vm200_vm2, %v820_v26 }
0x1081   :  { %2534 = vmatpush3.bf16.msra.mxu0 %v2531_v19  ;;  %2368 = vmatprep.mubr.msk.f32.mxu0 %vm200_vm2, %v1038_v27 }
0x1082   :  { %2536 = vmatprep.subr.bf16.mxu0 %v2535_v25 }
0x1085   :  { %2538 = vmatpush3.bf16.msra.mxu0 %v2535_v25 }
0x1086   :  { %2551 = vmatprep.subr.bf16.mxu0 %v2726_v0 }
0x1087   :  { %v1043_v32 = vld [vmem:[#allocation2 + $0x28] sm:$0xff] }
0x1088   :  { %2369 = vmatmul.mubr.msk.f32.vlgmr.msra.gmra.mrb[14].mxu0 %vm200_vm2, %v1039_v28 }
0x1089   :  { %2371 = vmatprep.mubr.msk.f32.mxu0 %vm200_vm2, %v1040_v29  ;;  %2553 = vmatpush3.bf16.msra.mxu0 %v3002_v55 }
0x108a   :  { %2554 = vmatprep.subr.bf16.mxu0 %v2726_v0 }
0x108c   :  { %2372 = vmatmul.mubr.msk.f32.gmra.mrb[16].mxu0 %vm200_vm2, %v1041_v30 }
0x108d   :  { %2374 = vmatprep.mubr.msk.f32.mxu0 %vm200_vm2, %v1042_v31  ;;  %2556 = vmatpush3.bf16.msra.mxu0 %v3012_v58 }
0x108e   :  { %2563 = vmatprep.subr.bf16.mxu0 %v2726_v0 }
0x1090   :  { %2375 = vmatmul.mubr.msk.f32.gmra.mrb[18].mxu0 %vm200_vm2, %v1043_v32 }
0x1153   :  { %v892_v34 = vpop.f32.mrb[12].mxu0 }
0x1154   :  { %v896_v35 = vadd.f32 %v892_v34, %v181_v33  ;;  %v2348_v36 = vpop.f32.mrb[13].mxu0 }
0x1156   :  { %2646 = vtanh.f32 %v896_v35  ;;  %v2117_v44 = vmul.f32 -1.442695, %v896_v35 }
0x1158   :  { %2648 = vpow2.f32 %v2117_v44 }
0x115b   :  { %v2980_v37 = vpop.f32.mrb[14].mxu0 }
0x115c   :  { %v1142_v38 = vpop.f32.mrb[15].mxu0 }
0x115d   :  { %v1143_v11 = vadd.f32 %v3045_v10, %v1142_v38 }
0x115f   :  { %v2982_v39 = vpop.f32.mrb[16].mxu0 }
0x1160   :  { %v2647_v40 = vpop.eup %2646  ;;  %v2984_v41 = vpop.f32.mrb[17].mxu0 }
0x1161   :  { %906 = vrot.lane.b32.xlu1 %v2647_v40, %s2729_s16 }
0x1162   :  { %v2649_v2 = vpop.eup %2648 }
0x1163   :  { %v2987_v42 = vpop.f32.mrb[18].mxu0  ;;  %v900_v45 = vadd.f32 1.0, %v2649_v2 }
0x1164   :  { %v2989_v43 = vpop.f32.mrb[19].mxu0 }
0x1165   :  { %2650 = vrcp.f32 %v900_v45  ;;  %v1148_v45 = vadd.f32 %v2980_v37, %v3045_v10 }
0x116f   :  { %v2651_v46 = vpop.eup %2650 }
0x1170   :  { %v904_v49 = vmul.f32 %v2651_v46, %v811_v62 }
0x11d3   :  { %v907_v47 = vpop.permute.xlu1 %906 }
0x11d4   :  { %v909_v48 = vmul.f32 %v2651_v46, %v907_v47 }
0x11d6   :  { %911 = vrot.lane.b32.xlu0 %v909_v48, %s2730_s19 }
0x1248   :  { %v912_v50 = vpop.permute.xlu0 %911 }
0x1249   :  { %v2992_v51 = vadd.f32 %v912_v50, %v904_v49 }
0x124b   :  { %2652 = vtanh.f32 %v2992_v51 }
0x1255   :  { %v2653_v52 = vpop.eup %2652 }
0x1256   :  { %917 = vrot.lane.b32.xlu1 %v2653_v52, %s2729_s16 }
0x12c8   :  { %v918_v59 = vpop.permute.xlu1 %917 }
0x12c9   :  { %v920_v60 = vmul.f32 %v2651_v46, %v918_v59 }
0x12cb   :  { %922 = vrot.lane.b32.xlu0 %v920_v60, %s2730_s19 }
0x12cf   :  { %1276 = vrot.lane.b32.xlu0 %v2130_v61, %s2730_s19 }
0x133d   :  { %v923_v63 = vpop.permute.xlu0 %922 }
0x133e   :  { %925 = vst.msk [vmem:[#allocation2 + $0x30] sm:$0xff] %vm200_vm2, %v923_v63  ;;  %2358 = vmatmul.mubr.msk.f32.vlgmr.msra.gmra.mrb[8].mxu1 %vm200_vm2, %v923_v63 }
0x133f   :  { %2541 = vmatpush3.bf16.msra.mxu1 %v3002_v55  ;;  %2388 = vmatprep.mubr.msk.f32.mxu1 %vm2727_vm1, %v2728_v4 }
0x1340   :  { %2542 = vmatprep.subr.bf16.mxu1 %v2726_v0 }
0x1341   :  { %v1277_v20 = vpop.permute.xlu0 %1276 }
0x1343   :  { %2544 = vmatpush3.bf16.msra.mxu1 %v3012_v58 }
0x1344   :  { %2545 = vmatprep.subr.bf16.mxu1 %v2726_v0 }
0x1345   :  { %v1044_v5 = vld [vmem:[#allocation2 + $0x30] sm:$0xff] }
0x1346   :  { %2389 = vmatmul.mubr.msk.f32.vlgmr.msra.gmra.mrb[10].mxu1 %vm200_vm2, %v2129_v3  ;;  %2377 = vmatprep.mubr.msk.f32.mxu0 %vm200_vm2, %v1044_v5 }
0x1347   :  { %2547 = vmatpush3.bf16.msra.mxu1 %v3002_v55  ;;  %2399 = vmatprep.mubr.msk.f32.mxu1 %vm2727_vm1, %v2728_v4 }
0x1348   :  { %2548 = vmatprep.subr.bf16.mxu1 %v2726_v0 }
0x134b   :  { %2550 = vmatpush3.bf16.msra.mxu1 %v3012_v58 }
0x134c   :  { %2557 = vmatprep.subr.bf16.mxu1 %v2726_v0 }
0x1411   :  { %v995_v7 = vpop.f32.mrb[8].mxu1 }
0x1412   :  { %v999_v8 = vadd.f32 %v995_v7, %v186_v6  ;;  %v2359_v9 = vpop.f32.mrb[9].mxu1 }
0x1413   :  { %v1153_v9 = vadd.f32 %v3045_v10, %v2984_v41 }
0x1414   :  { %v2119_v26 = vmul.f32 -1.442695, %v999_v8 }
0x1419   :  { %v1263_v13 = vpop.f32.mrb[10].mxu1 }
0x141a   :  { %v1267_v12 = vadd.f32 %v1263_v13, %v1143_v11  ;;  %v2390_v15 = vpop.f32.mrb[11].mxu1 }
0x141c   :  { %2654 = vtanh.f32 %v1267_v12  ;;  %v2132_v62 = vmul.f32 -1.442695, %v1267_v12 }
0x141e   :  { %2656 = vpow2.f32 %v2132_v62 }
0x1426   :  { %v2655_v16 = vpop.eup %2654 }
0x1427   :  { %1281 = vrot.lane.b32.xlu1 %v2655_v16, %s2729_s16 }
0x1428   :  { %v2657_v14 = vpop.eup %2656 }
0x1429   :  { %v1271_v1 = vadd.f32 1.0, %v2657_v14 }
0x142b   :  { %2658 = vrcp.f32 %v1271_v1 }
0x1435   :  { %v2659_v17 = vpop.eup %2658 }
0x1436   :  { %v1279_v21 = vmul.f32 %v2659_v17, %v1277_v20 }
0x1499   :  { %v1282_v18 = vpop.permute.xlu1 %1281 }
0x149a   :  { %v1284_v19 = vmul.f32 %v2659_v17, %v1282_v18 }
0x149c   :  { %1286 = vrot.lane.b32.xlu1 %v1284_v19, %s2730_s19 }
0x150e   :  { %v1287_v22 = vpop.permute.xlu1 %1286 }
0x150f   :  { %v1289_v23 = vadd.f32 %v1287_v22, %v1279_v21 }
0x1511   :  { %2660 = vtanh.f32 %v1289_v23 }
0x1512   :  { %2662 = vtanh.f32 %v999_v8 }
0x1513   :  { %2664 = vpow2.f32 %v2119_v26 }
0x151b   :  { %v2661_v24 = vpop.eup %2660 }
0x151c   :  { %1292 = vrot.lane.b32.xlu0 %v2661_v24, %s2729_s16  ;;  %v2663_v25 = vpop.eup %2662 }
0x151d   :  { %v2665_v27 = vpop.eup %2664 }
0x151e   :  { %v1003_v28 = vadd.f32 1.0, %v2665_v27 }
0x1520   :  { %1009 = vrot.lane.b32.xlu0 %v2663_v25, %s2729_s16  ;;  %2666 = vrcp.f32 %v1003_v28  ;;  %v1158_v25 = vadd.f32 %v2982_v39, %v3045_v10 }
0x152a   :  { %v2667_v31 = vpop.eup %2666 }
0x152b   :  { %v1007_v35 = vmul.f32 %v2667_v31, %v2992_v51 }
0x158e   :  { %v1293_v29 = vpop.permute.xlu0 %1292 }
0x158f   :  { %v1295_v30 = vmul.f32 %v2659_v17, %v1293_v29 }
0x1591   :  { %1298 = vrot.lane.b32.xlu1 %v1295_v30, %s2730_s19 }
0x1592   :  { %v1010_v32 = vpop.permute.xlu0 %1009 }
0x1593   :  { %v1012_v33 = vmul.f32 %v2667_v31, %v1010_v32 }
0x1595   :  { %1014 = vrot.lane.b32.xlu0 %v1012_v33, %s2730_s19 }
0x1603   :  { %v1299_v34 = vpop.permute.xlu1 %1298 }
0x1604   :  { %2400 = vmatmul.mubr.msk.f32.vlgmr.msra.gmra.mrb[12].mxu1 %vm200_vm2, %v1299_v34 }
0x1605   :  { %2559 = vmatpush3.bf16.msra.mxu1 %v3002_v55  ;;  %2421 = vmatprep.mubr.msk.f32.mxu1 %vm2727_vm1, %v2728_v4 }
0x1606   :  { %2560 = vmatprep.subr.bf16.mxu1 %v2726_v0 }
0x1607   :  { %v1015_v36 = vpop.permute.xlu0 %1014 }
0x1608   :  { %v1017_v38 = vadd.f32 %v1015_v36, %v1007_v35 }
0x1609   :  { %2562 = vmatpush3.bf16.msra.mxu1 %v3012_v58 }
0x160a   :  { %2668 = vtanh.f32 %v1017_v38  ;;  %2569 = vmatprep.subr.bf16.mxu1 %v2726_v0 }
0x1614   :  { %v2669_v40 = vpop.eup %2668 }
0x1615   :  { %1020 = vrot.lane.b32.xlu0 %v2669_v40, %s2729_s16 }
0x1687   :  { %v1021_v44 = vpop.permute.xlu0 %1020 }
0x1688   :  { %v1023_v2 = vmul.f32 %v2667_v31, %v1021_v44 }
0x168a   :  { %1025 = vrot.lane.b32.xlu0 %v1023_v2, %s2730_s19 }
0x16d7   :  { %v1368_v46 = vpop.f32.mrb[12].mxu1 }
0x16d8   :  { %v1372_v47 = vadd.f32 %v1368_v46, %v1148_v45  ;;  %v2401_v48 = vpop.f32.mrb[13].mxu1  ;;  %v1163_v46 = vadd.f32 %v3045_v10, %v2989_v43 }
0x16da   :  { %2670 = vtanh.f32 %v1372_v47  ;;  %v2134_v52 = vmul.f32 -1.442695, %v1372_v47 }
0x16dc   :  { %2672 = vpow2.f32 %v2134_v52 }
0x16e4   :  { %v2671_v49 = vpop.eup %2670 }
0x16e5   :  { %1382 = vrot.lane.b32.xlu1 %v2671_v49, %s2729_s16 }
0x16e6   :  { %v2673_v53 = vpop.eup %2672 }
0x16e7   :  { %v1376_v37 = vadd.f32 1.0, %v2673_v53 }
0x16e9   :  { %2674 = vrcp.f32 %v1376_v37 }
0x16f3   :  { %v2675_v54 = vpop.eup %2674 }
0x16f4   :  { %v1380_v59 = vmul.f32 %v2675_v54, %v1289_v23 }
0x16fc   :  { %v1026_v50 = vpop.permute.xlu0 %1025 }
0x16fd   :  { %1028 = vst.msk [vmem:[#allocation2 + $0x38] sm:$0xff] %vm200_vm2, %v1026_v50 }
0x1704   :  { %v1045_v51 = vld [vmem:[#allocation2 + $0x38] sm:$0xff] }
0x1705   :  { %2378 = vmatmul.mubr.msk.f32.gmra.mrb[20].mxu0 %vm200_vm2, %v1045_v51 }
0x1706   :  { %2410 = vmatprep.mubr.msk.f32.mxu0 %vm2727_vm1, %v2728_v4 }
0x1757   :  { %v1383_v56 = vpop.permute.xlu1 %1382 }
0x1758   :  { %v1385_v57 = vmul.f32 %v2675_v54, %v1383_v56 }
0x175a   :  { %1387 = vrot.lane.b32.xlu1 %v1385_v57, %s2730_s19 }
0x17cc   :  { %v1388_v60 = vpop.permute.xlu1 %1387 }
0x17cd   :  { %v1390_v61 = vadd.f32 %v1388_v60, %v1380_v59 }
0x17cf   :  { %2676 = vtanh.f32 %v1390_v61 }
0x17d8   :  { %v3072_v63 = vpop.f32.mrb[20].mxu0 }
0x17d9   :  { %v2677_v3 = vpop.eup %2676  ;;  %v3074_v5 = vpop.f32.mrb[21].mxu0 }
0x17da   :  { %1393 = vrot.lane.b32.xlu1 %v2677_v3, %s2729_s16 }
0x184c   :  { %v1394_v6 = vpop.permute.xlu1 %1393 }
0x184d   :  { %v1396_v7 = vmul.f32 %v2675_v54, %v1394_v6 }
0x184f   :  { %1399 = vrot.lane.b32.xlu1 %v1396_v7, %s2730_s19  ;;  %v1168_v7 = vadd.f32 %v2987_v42, %v3045_v10 }
0x18c1   :  { %v1400_v8 = vpop.permute.xlu1 %1399 }
0x18c2   :  { %2411 = vmatmul.mubr.msk.f32.vlgmr.msra.gmra.mrb[22].mxu0 %vm200_vm2, %v1400_v8 }
0x18c3   :  { %2565 = vmatpush3.bf16.msra.mxu0 %v3002_v55  ;;  %2432 = vmatprep.mubr.msk.f32.mxu0 %vm2727_vm1, %v2728_v4 }
0x18c4   :  { %2566 = vmatprep.subr.bf16.mxu0 %v2726_v0 }
0x18c7   :  { %2568 = vmatpush3.bf16.msra.mxu0 %v3012_v58 }
0x18c8   :  { %2575 = vmatprep.subr.bf16.mxu0 %v2726_v0 }
0x1995   :  { %v1469_v11 = vpop.f32.mrb[22].mxu0 }
0x1996   :  { %v1473_v13 = vadd.f32 %v1469_v11, %v1153_v9  ;;  %v2412_v12 = vpop.f32.mrb[23].mxu0 }
0x1998   :  { %2678 = vtanh.f32 %v1473_v13  ;;  %v2136_v16 = vmul.f32 -1.442695, %v1473_v13 }
0x199a   :  { %2680 = vpow2.f32 %v2136_v16 }
0x19a2   :  { %v2679_v15 = vpop.eup %2678 }
0x19a3   :  { %1483 = vrot.lane.b32.xlu0 %v2679_v15, %s2729_s16 }
0x19a4   :  { %v2681_v62 = vpop.eup %2680 }
0x19a5   :  { %v1477_v14 = vadd.f32 1.0, %v2681_v62 }
0x19a7   :  { %2682 = vrcp.f32 %v1477_v14 }
0x19b1   :  { %v2683_v1 = vpop.eup %2682 }
0x19b2   :  { %v1481_v19 = vmul.f32 %v2683_v1, %v1390_v61 }
0x1a15   :  { %v1484_v17 = vpop.permute.xlu0 %1483 }
0x1a16   :  { %v1486_v18 = vmul.f32 %v2683_v1, %v1484_v17 }
0x1a18   :  { %1488 = vrot.lane.b32.xlu1 %v1486_v18, %s2730_s19 }
0x1a8a   :  { %v1489_v20 = vpop.permute.xlu1 %1488 }
0x1a8b   :  { %v1491_v41 = vadd.f32 %v1489_v20, %v1481_v19 }
0x1a8d   :  { %2684 = vtanh.f32 %v1491_v41 }
0x1a97   :  { %v2685_v21 = vpop.eup %2684 }
0x1a98   :  { %1494 = vrot.lane.b32.xlu0 %v2685_v21, %s2729_s16 }
0x1b0a   :  { %v1495_v22 = vpop.permute.xlu0 %1494 }
0x1b0b   :  { %v1497_v23 = vmul.f32 %v2683_v1, %v1495_v22 }
0x1b0d   :  { %1500 = vrot.lane.b32.xlu1 %v1497_v23, %s2730_s19 }
0x1b7f   :  { %v1501_v24 = vpop.permute.xlu1 %1500 }
0x1b80   :  { %2422 = vmatmul.mubr.msk.f32.vlgmr.msra.gmra.mrb[14].mxu1 %vm200_vm2, %v1501_v24 }
0x1b81   :  { %2571 = vmatpush3.bf16.msra.mxu1 %v3002_v55  ;;  %2443 = vmatprep.mubr.msk.f32.mxu1 %vm2727_vm1, %v2728_v4 }
0x1b82   :  { %2572 = vmatprep.subr.bf16.mxu1 %v2726_v0 }
0x1b85   :  { %2574 = vmatpush3.bf16.msra.mxu1 %v3012_v58 }
0x1b86   :  { %2581 = vmatprep.subr.bf16.mxu1 %v2726_v0 }
0x1c53   :  { %v1570_v26 = vpop.f32.mrb[14].mxu1 }
0x1c54   :  { %v1574_v27 = vadd.f32 %v1570_v26, %v1158_v25  ;;  %v2423_v28 = vpop.f32.mrb[15].mxu1 }
0x1c56   :  { %2686 = vtanh.f32 %v1574_v27  ;;  %v2138_v30 = vmul.f32 -1.442695, %v1574_v27 }
0x1c58   :  { %2688 = vpow2.f32 %v2138_v30 }
0x1c60   :  { %v2687_v29 = vpop.eup %2686 }
0x1c61   :  { %1584 = vrot.lane.b32.xlu0 %v2687_v29, %s2729_s16 }
0x1c62   :  { %v2689_v31 = vpop.eup %2688 }
0x1c63   :  { %v1578_v32 = vadd.f32 1.0, %v2689_v31 }
0x1c65   :  { %2690 = vrcp.f32 %v1578_v32 }
0x1c6f   :  { %v2691_v33 = vpop.eup %2690 }
0x1c70   :  { %v1582_v36 = vmul.f32 %v2691_v33, %v1491_v41  ;;  %v1173_v41 = vadd.f32 %v3045_v10, %v3074_v5 }
0x1cd3   :  { %v1585_v34 = vpop.permute.xlu0 %1584 }
0x1cd4   :  { %v1587_v35 = vmul.f32 %v2691_v33, %v1585_v34 }
0x1cd6   :  { %1589 = vrot.lane.b32.xlu1 %v1587_v35, %s2730_s19 }
0x1d48   :  { %v1590_v38 = vpop.permute.xlu1 %1589 }
0x1d49   :  { %v1592_v39 = vadd.f32 %v1590_v38, %v1582_v36  ;;  %v1178_v36 = vadd.f32 %v3072_v63, %v3045_v10  ;;  %v2003_v63 = vld [vmem:[%s3174_s9] sm:$0xff] }
0x1d4b   :  { %2692 = vtanh.f32 %v1592_v39 }
0x1d55   :  { %v2693_v40 = vpop.eup %2692 }
0x1d56   :  { %1595 = vrot.lane.b32.xlu0 %v2693_v40, %s2729_s16 }
0x1dc8   :  { %v1596_v44 = vpop.permute.xlu0 %1595 }
0x1dc9   :  { %v1598_v2 = vmul.f32 %v2691_v33, %v1596_v44 }
0x1dcb   :  { %1601 = vrot.lane.b32.xlu1 %v1598_v2, %s2730_s19 }
0x1e3d   :  { %v1602_v45 = vpop.permute.xlu1 %1601 }
0x1e3e   :  { %2433 = vmatmul.mubr.msk.f32.vlgmr.msra.gmra.mrb[24].mxu0 %vm200_vm2, %v1602_v45 }
0x1e3f   :  { %2577 = vmatpush3.bf16.msra.mxu0 %v3002_v55  ;;  %2454 = vmatprep.mubr.msk.f32.mxu0 %vm2727_vm1, %v2728_v4 }
0x1e40   :  { %2578 = vmatprep.subr.bf16.mxu0 %v2726_v0 }
0x1e43   :  { %2580 = vmatpush3.bf16.msra.mxu0 %v3012_v58 }
0x1e44   :  { %2587 = vmatprep.subr.bf16.mxu0 %v2726_v0 }
0x1f11   :  { %v1671_v47 = vpop.f32.mrb[24].mxu0 }
0x1f12   :  { %v1675_v48 = vadd.f32 %v1671_v47, %v1163_v46  ;;  %v2434_v49 = vpop.f32.mrb[25].mxu0 }
0x1f14   :  { %2694 = vtanh.f32 %v1675_v48  ;;  %v2140_v51 = vmul.f32 -1.442695, %v1675_v48 }
0x1f16   :  { %2696 = vpow2.f32 %v2140_v51 }
0x1f1e   :  { %v2695_v50 = vpop.eup %2694 }
0x1f1f   :  { %1685 = vrot.lane.b32.xlu0 %v2695_v50, %s2729_s16 }
0x1f20   :  { %v2697_v52 = vpop.eup %2696 }
0x1f21   :  { %v1679_v53 = vadd.f32 1.0, %v2697_v52  ;;  %v2004_v52 = vld [vmem:[%s3174_s9 + $0x8] sm:$0xff] }
0x1f23   :  { %2698 = vrcp.f32 %v1679_v53  ;;  %v2005_v53 = vld [vmem:[%s3174_s9 + $0x10] sm:$0xff] }
0x1f2d   :  { %v2699_v37 = vpop.eup %2698 }
0x1f2e   :  { %v1683_v57 = vmul.f32 %v2699_v37, %v1592_v39 }
0x1f91   :  { %v1686_v54 = vpop.permute.xlu0 %1685 }
0x1f92   :  { %v1688_v56 = vmul.f32 %v2699_v37, %v1686_v54  ;;  %v2006_v54 = vld [vmem:[%s3174_s9 + $0x18] sm:$0xff] }
0x1f94   :  { %1690 = vrot.lane.b32.xlu1 %v1688_v56, %s2730_s19  ;;  %v2591_v56 = vpack.c.bf16 %v2006_v54, %v2005_v53 }
0x2006   :  { %v1691_v59 = vpop.permute.xlu1 %1690 }
0x2007   :  { %v1693_v43 = vadd.f32 %v1691_v59, %v1683_v57 }
0x2009   :  { %2700 = vtanh.f32 %v1693_v43 }
0x2013   :  { %v2701_v60 = vpop.eup %2700 }
0x2014   :  { %1696 = vrot.lane.b32.xlu0 %v2701_v60, %s2729_s16 }
0x2086   :  { %v1697_v61 = vpop.permute.xlu0 %1696 }
0x2087   :  { %v1699_v3 = vmul.f32 %v2699_v37, %v1697_v61  ;;  %v2588_v37 = vpack.c.bf16 %v2004_v52, %v2003_v63  ;;  %v2147_v61 = vld [vmem:[%s3175_s10] ss:$0 sm:$0xff] }
0x2089   :  { %1702 = vrot.lane.b32.xlu1 %v1699_v3, %s2730_s19 }
0x20fb   :  { %v1703_v6 = vpop.permute.xlu1 %1702 }
0x20fc   :  { %2444 = vmatmul.mubr.msk.f32.vlgmr.msra.gmra.mrb[16].mxu1 %vm200_vm2, %v1703_v6 }
0x20fd   :  { %2583 = vmatpush3.bf16.msra.mxu1 %v3002_v55  ;;  %2465 = vmatprep.mubr.msk.f32.mxu1 %vm2727_vm1, %v2728_v4 }
0x20fe   :  { %2584 = vmatprep.subr.bf16.mxu1 %v2726_v0 }
0x2101   :  { %2586 = vmatpush3.bf16.msra.mxu1 %v3012_v58 }
0x21cf   :  { %v1772_v8 = vpop.f32.mrb[16].mxu1 }
0x21d0   :  { %v1776_v9 = vadd.f32 %v1772_v8, %v1168_v7  ;;  %v2445_v11 = vpop.f32.mrb[17].mxu1 }
0x21d2   :  { %2702 = vtanh.f32 %v1776_v9  ;;  %v2142_v12 = vmul.f32 -1.442695, %v1776_v9 }
0x21d4   :  { %2704 = vpow2.f32 %v2142_v12 }
0x21dc   :  { %v2703_v13 = vpop.eup %2702 }
0x21dd   :  { %1786 = vrot.lane.b32.xlu0 %v2703_v13, %s2729_s16 }
0x21de   :  { %v2705_v55 = vpop.eup %2704 }
0x21df   :  { %v1780_v15 = vadd.f32 1.0, %v2705_v55 }
0x21e1   :  { %2706 = vrcp.f32 %v1780_v15 }
0x21eb   :  { %v2707_v16 = vpop.eup %2706 }
0x21ec   :  { %v1784_v58 = vmul.f32 %v2707_v16, %v1693_v43 }
0x224f   :  { %v1787_v62 = vpop.permute.xlu0 %1786 }
0x2250   :  { %v1789_v14 = vmul.f32 %v2707_v16, %v1787_v62 }
0x2252   :  { %1791 = vrot.lane.b32.xlu1 %v1789_v14, %s2730_s19 }
0x22c4   :  { %v1792_v1 = vpop.permute.xlu1 %1791 }
0x22c5   :  { %v1794_v42 = vadd.f32 %v1792_v1, %v1784_v58 }
0x22c7   :  { %2708 = vtanh.f32 %v1794_v42 }
0x22d1   :  { %v2709_v17 = vpop.eup %2708 }
0x22d2   :  { %1797 = vrot.lane.b32.xlu0 %v2709_v17, %s2729_s16 }
0x2344   :  { %v1798_v18 = vpop.permute.xlu0 %1797 }
0x2345   :  { %v1800_v19 = vmul.f32 %v2707_v16, %v1798_v18 }
0x2347   :  { %1803 = vrot.lane.b32.xlu1 %v1800_v19, %s2730_s19 }
0x23b9   :  { %v1804_v20 = vpop.permute.xlu1 %1803 }
0x23ba   :  { %2455 = vmatmul.mubr.msk.f32.vlgmr.msra.gmra.mrb[26].mxu0 %vm200_vm2, %v1804_v20 }
0x23bb   :  { %2476 = vmatprep.mubr.msk.f32.mxu0 %vm2727_vm1, %v2728_v4  ;;  %2589 = vmatpush3.bf16.msra.mxu0 %v2588_v37 }
0x23bc   :  { %2590 = vmatprep.subr.bf16.mxu0 %v2726_v0 }
0x23bf   :  { %2592 = vmatpush3.bf16.msra.mxu0 %v2591_v56 }
0x248d   :  { %v1873_v21 = vpop.f32.mrb[26].mxu0 }
0x248e   :  { %v1877_v22 = vadd.f32 %v1873_v21, %v1173_v41  ;;  %v2456_v23 = vpop.f32.mrb[27].mxu0 }
0x2490   :  { %2710 = vtanh.f32 %v1877_v22  ;;  %v2144_v25 = vmul.f32 -1.442695, %v1877_v22 }
0x2492   :  { %2712 = vpow2.f32 %v2144_v25 }
0x249a   :  { %v2711_v24 = vpop.eup %2710 }
0x249b   :  { %1887 = vrot.lane.b32.xlu0 %v2711_v24, %s2729_s16 }
0x249c   :  { %v2713_v26 = vpop.eup %2712 }
0x249d   :  { %v1881_v27 = vadd.f32 1.0, %v2713_v26 }
0x249f   :  { %2714 = vrcp.f32 %v1881_v27 }
0x24a9   :  { %v2715_v28 = vpop.eup %2714 }
0x24aa   :  { %v1885_v4 = vmul.f32 %v2715_v28, %v1794_v42 }
0x250d   :  { %v1888_v29 = vpop.permute.xlu0 %1887 }
0x250e   :  { %v1890_v30 = vmul.f32 %v2715_v28, %v1888_v29 }
0x2510   :  { %1892 = vrot.lane.b32.xlu1 %v1890_v30, %s2730_s19 }
0x2582   :  { %v1893_v31 = vpop.permute.xlu1 %1892 }
0x2583   :  { %v1895_v5 = vadd.f32 %v1893_v31, %v1885_v4 }
0x2585   :  { %2716 = vtanh.f32 %v1895_v5 }
0x258f   :  { %v2717_v32 = vpop.eup %2716 }
0x2590   :  { %1898 = vrot.lane.b32.xlu0 %v2717_v32, %s2729_s16 }
0x2602   :  { %v1899_v33 = vpop.permute.xlu0 %1898 }
0x2603   :  { %v1901_v34 = vmul.f32 %v2715_v28, %v1899_v33 }
0x2605   :  { %1904 = vrot.lane.b32.xlu1 %v1901_v34, %s2730_s19 }
0x2677   :  { %v1905_v35 = vpop.permute.xlu1 %1904 }
0x2678   :  { %2466 = vmatmul.mubr.msk.f32.vlgmr.msra.gmra.mrb[18].mxu1 %vm200_vm2, %v1905_v35 }
0x274b   :  { %v1974_v38 = vpop.f32.mrb[18].mxu1 }
0x274c   :  { %v1978_v39 = vadd.f32 %v1974_v38, %v1178_v36  ;;  %v2467_v40 = vpop.f32.mrb[19].mxu1 }
0x274e   :  { %2718 = vtanh.f32 %v1978_v39  ;;  %v2146_v2 = vmul.f32 -1.442695, %v1978_v39 }
0x2750   :  { %2720 = vpow2.f32 %v2146_v2 }
0x2758   :  { %v2719_v44 = vpop.eup %2718 }
0x2759   :  { %1988 = vrot.lane.b32.xlu0 %v2719_v44, %s2729_s16 }
0x275a   :  { %v2721_v45 = vpop.eup %2720 }
0x275b   :  { %v1982_v46 = vadd.f32 1.0, %v2721_v45 }
0x275d   :  { %2722 = vrcp.f32 %v1982_v46 }
0x2767   :  { %v2723_v47 = vpop.eup %2722 }
0x2768   :  { %v1986_v50 = vmul.f32 %v2723_v47, %v1895_v5 }
0x27cb   :  { %v1989_v48 = vpop.permute.xlu0 %1988 }
0x27cc   :  { %v1991_v49 = vmul.f32 %v2723_v47, %v1989_v48 }
0x27ce   :  { %1993 = vrot.lane.b32.xlu1 %v1991_v49, %s2730_s19 }
0x2840   :  { %v1994_v51 = vpop.permute.xlu1 %1993 }
0x2841   :  { %v1996_v10 = vadd.f32 %v1994_v51, %v1986_v50 }
0x2843   :  { %2724 = vtanh.f32 %v1996_v10 }
0x284d   :  { %v2725_v57 = vpop.eup %2724 }
0x284e   :  { %1999 = vrot.lane.b32.xlu0 %v2725_v57, %s2729_s16 }
0x28c0   :  { %v2000_v59 = vpop.permute.xlu0 %1999 }
0x28c1   :  { %v2002_v43 = vmul.f32 %v2723_v47, %v2000_v59 }
0x28c3   :  { %2015 = vrot.lane.b32.xlu1 %v2002_v43, %s2730_s19 }
0x2935   :  { %v2016_v60 = vpop.permute.xlu1 %2015 }
0x2936   :  { %2477 = vmatmul.mubr.msk.f32.vlgmr.msra.gmra.mrb[28].mxu0 %vm200_vm2, %v2016_v60 }
0x2a09   :  { %v2085_v3 = vpop.f32.mrb[28].mxu0 }
0x2a0a   :  { %v2086_v6 = vadd.f32 %v2147_v61, %v2085_v3  ;;  %v2478_v7 = vpop.f32.mrb[29].mxu0 }
0x2a0c   :  { %2090 = vst.msk [vmem:[%s3176_s11] sm:$0xff] %vm2089_vm3, %v2086_v6 }

</bundles_post_ra>
